<compile_context>
chip_gen: v6e
topology: v6e:2x2x1
jax: 0.10.0
libtpu: 0.0.40
codegen_flags: <defaults>
</compile_context>

<pallas_src>
import functools

import jax
import jax.numpy as jnp
import numpy as np
from jax.experimental import pallas as pl
from jax.experimental.pallas import tpu as pltpu


def _lstm_kernel(x_ref, w_ih_ref, w_hh_ref, b_ref, out_ref, *, seq_len, hp):
    """x: (T, B, 1); w_ih: (1, 4*Hp); w_hh: (Hp, 4*Hp); b: (1, 4*Hp);
    out: (T, B, Hp).  Gate order [i, f, g, o], each block Hp wide."""
    B = x_ref.shape[1]

    # Input projection hoisted out of the recurrence (input_size == 1):
    # (T, B, 1) * (1, 4*Hp) + (1, 4*Hp) -> (T, B, 4*Hp), VPU only.
    pre_gates = x_ref[...] * w_ih_ref[...] + b_ref[...]

    w_hh = w_hh_ref[...]                          # (Hp, 4*Hp), resident in VMEM

    h = jnp.zeros((B, hp), jnp.float32)           # recurrence carried in registers
    c = jnp.zeros((B, hp), jnp.float32)

    # seq_len is a trace-time constant -> fully unrolled loop, all slice
    # indices static and lane-aligned.
    for t in range(seq_len):
        gates = pre_gates[t] + jnp.dot(h, w_hh,
                                       preferred_element_type=jnp.float32)
        i_g = jax.nn.sigmoid(gates[:, 0 * hp:1 * hp])
        f_g = jax.nn.sigmoid(gates[:, 1 * hp:2 * hp])
        g_g = jnp.tanh(gates[:, 2 * hp:3 * hp])
        o_g = jax.nn.sigmoid(gates[:, 3 * hp:4 * hp])
        c = f_g * c + i_g * g_g
        h = o_g * jnp.tanh(c)
        out_ref[t] = h                            # (B, Hp) lane-dense store


def _pack_params(w_ih, w_hh, b_ih, b_hh, hp):
    """PyTorch-layout LSTM params -> transposed, per-gate zero-padded layout.

    w_ih: (4H, 1), w_hh: (4H, H), b_ih/b_hh: (4H,)  (gate order [i, f, g, o]).
    Returns w_ih_p (1, 4*Hp), w_hh_p (Hp, 4*Hp), b_p (1, 4*Hp).
    """
    H = w_hh.shape[1]
    pad = hp - H
    # (4H, 1) -> (1, 4H) -> (1, 4, H) -> pad per gate -> (1, 4*Hp)
    w_ih_p = jnp.pad(w_ih.T.reshape(1, 4, H),
                     ((0, 0), (0, 0), (0, pad))).reshape(1, 4 * hp)
    # (4H, H) -> (H, 4H) -> (H, 4, H) -> pad rows (h dim) and per-gate cols
    w_hh_p = jnp.pad(w_hh.T.reshape(H, 4, H),
                     ((0, pad), (0, 0), (0, pad))).reshape(hp, 4 * hp)
    b_p = jnp.pad((b_ih + b_hh).reshape(4, H),
                  ((0, 0), (0, pad))).reshape(1, 4 * hp)
    return w_ih_p, w_hh_p, b_p


@jax.jit
def lstm_forward(input_seq, w_ih, w_hh, b_ih, b_hh):
    """input_seq: (T, B) float32 -> lstm_out: (T, B, H) float32."""
    T, B = input_seq.shape
    H = w_hh.shape[1]
    Hp = ((H + 127) // 128) * 128                 # 100 -> 128 (lane aligned)

    x = input_seq[:, :, None].astype(jnp.float32)  # (T, B, 1) == unsqueeze(dim=2)
    w_ih_p, w_hh_p, b_p = _pack_params(w_ih, w_hh, b_ih, b_hh, Hp)

    kernel = functools.partial(_lstm_kernel, seq_len=T, hp=Hp)

    grid_spec = pltpu.PrefetchScalarGridSpec(
        num_scalar_prefetch=0,
        grid=(1,),                                 # single invocation
        in_specs=[
            pl.BlockSpec((T, B, 1), lambda i: (0, 0, 0)),      # whole input
            pl.BlockSpec((1, 4 * Hp), lambda i: (0, 0)),       # W_ih^T (padded)
            pl.BlockSpec((Hp, 4 * Hp), lambda i: (0, 0)),      # W_hh^T (padded)
            pl.BlockSpec((1, 4 * Hp), lambda i: (0, 0)),       # b_ih + b_hh
        ],
        out_specs=pl.BlockSpec((T, B, Hp), lambda i: (0, 0, 0)),
    )

    out_padded = pl.pallas_call(
        kernel,
        out_shape=jax.ShapeDtypeStruct((T, B, Hp), jnp.float32),
        grid_spec=grid_spec,
        compiler_params=pltpu.CompilerParams(
            dimension_semantics=("arbitrary",)),
    )(x, w_ih_p, w_hh_p, b_p)

    return out_padded[:, :, :H]                    # drop padded lanes -> lstm_out


def lstm_reference(input_seq, w_ih, w_hh, b_ih, b_hh):
    """Pure-JAX reference of BaseLSTM.forward (PyTorch weight layout)."""
    x = input_seq[:, :, None]
    T, B, _ = x.shape
    H = w_hh.shape[1]
    h = jnp.zeros((B, H), jnp.float32)
    c = jnp.zeros((B, H), jnp.float32)
    outs = []
    for t in range(T):
        gates = x[t] @ w_ih.T + h @ w_hh.T + b_ih + b_hh
        i_g = jax.nn.sigmoid(gates[:, 0 * H:1 * H])
        f_g = jax.nn.sigmoid(gates[:, 1 * H:2 * H])
        g_g = jnp.tanh(gates[:, 2 * H:3 * H])
        o_g = jax.nn.sigmoid(gates[:, 3 * H:4 * H])
        c = f_g * c + i_g * g_g
        h = o_g * jnp.tanh(c)
        outs.append(h)
    return jnp.stack(outs, axis=0)                 # (T, B, H)


if __name__ == "__main__":
    # Module defaults: input_size=1, hidden_layer_size=100, batch_size=8.
    # Small sequence length; initial (h, c) are zeros (self.hidden_cell).
    batch_size = 8
    input_size = 1
    hidden = 100
    seq_len = 8

    key = jax.random.PRNGKey(0)
    k_x, k_wih, k_whh, k_bih, k_bhh = jax.random.split(key, 5)

    # PyTorch-style uniform(-1/sqrt(H), 1/sqrt(H)) init, PyTorch layout.
    bound = 1.0 / np.sqrt(hidden)
    w_ih = jax.random.uniform(k_wih, (4 * hidden, input_size), jnp.float32,
                              -bound, bound)
    w_hh = jax.random.uniform(k_whh, (4 * hidden, hidden), jnp.float32,
                              -bound, bound)
    b_ih = jax.random.uniform(k_bih, (4 * hidden,), jnp.float32, -bound, bound)
    b_hh = jax.random.uniform(k_bhh, (4 * hidden,), jnp.float32, -bound, bound)

    # (seq_len, batch) as fed to the PyTorch module before unsqueeze(dim=2).
    input_seq = jax.random.normal(k_x, (seq_len, batch_size), jnp.float32)

    out = lstm_forward(input_seq, w_ih, w_hh, b_ih, b_hh)
    out = jax.block_until_ready(out)

    ref = lstm_reference(input_seq, w_ih, w_hh, b_ih, b_hh)
    np.testing.assert_allclose(np.asarray(out), np.asarray(ref),
                               rtol=1e-5, atol=1e-5)

    print("KERNEL_OK")
</pallas_src>

<mosaic_0001>
module attributes {stable_mosaic.version = 11 : i64} {
  func.func @_lstm_kernel(%arg0: i32, %arg1: memref<8x8x1xf32, #tpu.memory_space<vmem>>, %arg2: memref<1x512xf32, #tpu.memory_space<vmem>>, %arg3: memref<128x512xf32, #tpu.memory_space<vmem>>, %arg4: memref<1x512xf32, #tpu.memory_space<vmem>>, %arg5: memref<8x8x128xf32, #tpu.memory_space<vmem>>) attributes {dimension_semantics = [#tpu.dimension_semantics<arbitrary>], iteration_bounds = array<i64: 1>, scalar_prefetch = 0 : i64, scratch_operands = 0 : i64, tpu.core_type = #tpu.core_type<tc>, window_params = [{pipeline_mode = #tpu.pipeline_mode<synchronous>, transform_indices = @transform_0, window_bounds = array<i64: 8, 8, 1>}, {pipeline_mode = #tpu.pipeline_mode<synchronous>, transform_indices = @transform_1, window_bounds = array<i64: 1, 512>}, {pipeline_mode = #tpu.pipeline_mode<synchronous>, transform_indices = @transform_2, window_bounds = array<i64: 128, 512>}, {pipeline_mode = #tpu.pipeline_mode<synchronous>, transform_indices = @transform_3, window_bounds = array<i64: 1, 512>}, {pipeline_mode = #tpu.pipeline_mode<synchronous>, transform_indices = @transform_4, window_bounds = array<i64: 8, 8, 128>}]} {
    %c0 = arith.constant 0 : index
    %c0_0 = arith.constant 0 : index
    %c0_1 = arith.constant 0 : index
    %0 = vector.load %arg1[%c0, %c0_0, %c0_1] : memref<8x8x1xf32, #tpu.memory_space<vmem>>, vector<8x8x1xf32>
    %c0_2 = arith.constant 0 : index
    %c0_3 = arith.constant 0 : index
    %1 = vector.load %arg2[%c0_2, %c0_3] : memref<1x512xf32, #tpu.memory_space<vmem>>, vector<1x512xf32>
    %2 = vector.shape_cast %1 : vector<1x512xf32> to vector<1x1x512xf32>
    %3 = vector.broadcast %0 : vector<8x8x1xf32> to vector<8x8x512xf32>
    %4 = vector.broadcast %2 : vector<1x1x512xf32> to vector<8x8x512xf32>
    %5 = arith.mulf %3, %4 : vector<8x8x512xf32>
    %c0_4 = arith.constant 0 : index
    %c0_5 = arith.constant 0 : index
    %6 = vector.load %arg4[%c0_4, %c0_5] : memref<1x512xf32, #tpu.memory_space<vmem>>, vector<1x512xf32>
    %7 = vector.shape_cast %6 : vector<1x512xf32> to vector<1x1x512xf32>
    %8 = vector.broadcast %7 : vector<1x1x512xf32> to vector<8x8x512xf32>
    %9 = arith.addf %5, %8 : vector<8x8x512xf32>
    %c0_6 = arith.constant 0 : index
    %c0_7 = arith.constant 0 : index
    %10 = vector.load %arg3[%c0_6, %c0_7] : memref<128x512xf32, #tpu.memory_space<vmem>>, vector<128x512xf32>
    %cst = arith.constant 0.000000e+00 : f32
    %11 = vector.broadcast %cst : f32 to vector<8x128xf32>
    %cst_8 = arith.constant 0.000000e+00 : f32
    %12 = vector.broadcast %cst_8 : f32 to vector<8x128xf32>
    %13 = vector.extract_strided_slice %9 {offsets = [0, 0, 0], sizes = [1, 8, 512], strides = [1, 1, 1]} : vector<8x8x512xf32> to vector<1x8x512xf32>
    %14 = vector.shape_cast %13 : vector<1x8x512xf32> to vector<8x512xf32>
    %cst_9 = arith.constant dense<0.000000e+00> : vector<8x512xf32>
    %15 = tpu.matmul %11, %10, %cst_9 {dimension_numbers = #tpu.dot_dimension_numbers<[1], [0], [0], [1], [0, 0, 1, 1], [], []>} : vector<8x128xf32>, vector<128x512xf32>, vector<8x512xf32> -> vector<8x512xf32>
    %16 = arith.addf %14, %15 : vector<8x512xf32>
    %17 = vector.extract_strided_slice %16 {offsets = [0, 0], sizes = [8, 128], strides = [1, 1]} : vector<8x512xf32> to vector<8x128xf32>
    %18 = arith.negf %17 : vector<8x128xf32>
    %19 = math.exp %18 : vector<8x128xf32>
    %cst_10 = arith.constant 1.000000e+00 : f32
    %20 = vector.broadcast %cst_10 : f32 to vector<8x128xf32>
    %21 = arith.addf %20, %19 : vector<8x128xf32>
    %22 = arith.divf %20, %21 : vector<8x128xf32>
    %23 = vector.extract_strided_slice %16 {offsets = [0, 128], sizes = [8, 128], strides = [1, 1]} : vector<8x512xf32> to vector<8x128xf32>
    %24 = arith.negf %23 : vector<8x128xf32>
    %25 = math.exp %24 : vector<8x128xf32>
    %cst_11 = arith.constant 1.000000e+00 : f32
    %26 = vector.broadcast %cst_11 : f32 to vector<8x128xf32>
    %27 = arith.addf %26, %25 : vector<8x128xf32>
    %28 = arith.divf %26, %27 : vector<8x128xf32>
    %29 = vector.extract_strided_slice %16 {offsets = [0, 256], sizes = [8, 128], strides = [1, 1]} : vector<8x512xf32> to vector<8x128xf32>
    %30 = math.tanh %29 : vector<8x128xf32>
    %31 = vector.extract_strided_slice %16 {offsets = [0, 384], sizes = [8, 128], strides = [1, 1]} : vector<8x512xf32> to vector<8x128xf32>
    %32 = arith.negf %31 : vector<8x128xf32>
    %33 = math.exp %32 : vector<8x128xf32>
    %cst_12 = arith.constant 1.000000e+00 : f32
    %34 = vector.broadcast %cst_12 : f32 to vector<8x128xf32>
    %35 = arith.addf %34, %33 : vector<8x128xf32>
    %36 = arith.divf %34, %35 : vector<8x128xf32>
    %37 = arith.mulf %28, %12 : vector<8x128xf32>
    %38 = arith.mulf %22, %30 : vector<8x128xf32>
    %39 = arith.addf %37, %38 : vector<8x128xf32>
    %40 = math.tanh %39 : vector<8x128xf32>
    %41 = arith.mulf %36, %40 : vector<8x128xf32>
    %c0_13 = arith.constant 0 : index
    %c0_14 = arith.constant 0 : index
    %c0_15 = arith.constant 0 : index
    %42 = vector.load %arg5[%c0_13, %c0_14, %c0_15] : memref<8x8x128xf32, #tpu.memory_space<vmem>>, vector<1x8x128xf32>
    %43 = vector.shape_cast %42 : vector<1x8x128xf32> to vector<8x128xf32>
    %44 = vector.shape_cast %41 : vector<8x128xf32> to vector<1x8x128xf32>
    tpu.vector_store %arg5[%c0_13, %c0_14, %c0_15], %44 {strides = array<i32>} : memref<8x8x128xf32, #tpu.memory_space<vmem>>, vector<1x8x128xf32>,
    %45 = vector.extract_strided_slice %9 {offsets = [1, 0, 0], sizes = [1, 8, 512], strides = [1, 1, 1]} : vector<8x8x512xf32> to vector<1x8x512xf32>
    %46 = vector.shape_cast %45 : vector<1x8x512xf32> to vector<8x512xf32>
    %cst_16 = arith.constant dense<0.000000e+00> : vector<8x512xf32>
    %47 = tpu.matmul %41, %10, %cst_16 {dimension_numbers = #tpu.dot_dimension_numbers<[1], [0], [0], [1], [0, 0, 1, 1], [], []>} : vector<8x128xf32>, vector<128x512xf32>, vector<8x512xf32> -> vector<8x512xf32>
    %48 = arith.addf %46, %47 : vector<8x512xf32>
    %49 = vector.extract_strided_slice %48 {offsets = [0, 0], sizes = [8, 128], strides = [1, 1]} : vector<8x512xf32> to vector<8x128xf32>
    %50 = arith.negf %49 : vector<8x128xf32>
    %51 = math.exp %50 : vector<8x128xf32>
    %cst_17 = arith.constant 1.000000e+00 : f32
    %52 = vector.broadcast %cst_17 : f32 to vector<8x128xf32>
    %53 = arith.addf %52, %51 : vector<8x128xf32>
    %54 = arith.divf %52, %53 : vector<8x128xf32>
    %55 = vector.extract_strided_slice %48 {offsets = [0, 128], sizes = [8, 128], strides = [1, 1]} : vector<8x512xf32> to vector<8x128xf32>
    %56 = arith.negf %55 : vector<8x128xf32>
    %57 = math.exp %56 : vector<8x128xf32>
    %cst_18 = arith.constant 1.000000e+00 : f32
    %58 = vector.broadcast %cst_18 : f32 to vector<8x128xf32>
    %59 = arith.addf %58, %57 : vector<8x128xf32>
    %60 = arith.divf %58, %59 : vector<8x128xf32>
    %61 = vector.extract_strided_slice %48 {offsets = [0, 256], sizes = [8, 128], strides = [1, 1]} : vector<8x512xf32> to vector<8x128xf32>
    %62 = math.tanh %61 : vector<8x128xf32>
    %63 = vector.extract_strided_slice %48 {offsets = [0, 384], sizes = [8, 128], strides = [1, 1]} : vector<8x512xf32> to vector<8x128xf32>
    %64 = arith.negf %63 : vector<8x128xf32>
    %65 = math.exp %64 : vector<8x128xf32>
    %cst_19 = arith.constant 1.000000e+00 : f32
    %66 = vector.broadcast %cst_19 : f32 to vector<8x128xf32>
    %67 = arith.addf %66, %65 : vector<8x128xf32>
    %68 = arith.divf %66, %67 : vector<8x128xf32>
    %69 = arith.mulf %60, %39 : vector<8x128xf32>
    %70 = arith.mulf %54, %62 : vector<8x128xf32>
    %71 = arith.addf %69, %70 : vector<8x128xf32>
    %72 = math.tanh %71 : vector<8x128xf32>
    %73 = arith.mulf %68, %72 : vector<8x128xf32>
    %c1 = arith.constant 1 : index
    %c0_20 = arith.constant 0 : index
    %c0_21 = arith.constant 0 : index
    %74 = vector.load %arg5[%c1, %c0_20, %c0_21] : memref<8x8x128xf32, #tpu.memory_space<vmem>>, vector<1x8x128xf32>
    %75 = vector.shape_cast %74 : vector<1x8x128xf32> to vector<8x128xf32>
    %76 = vector.shape_cast %73 : vector<8x128xf32> to vector<1x8x128xf32>
    tpu.vector_store %arg5[%c1, %c0_20, %c0_21], %76 {strides = array<i32>} : memref<8x8x128xf32, #tpu.memory_space<vmem>>, vector<1x8x128xf32>,
    %77 = vector.extract_strided_slice %9 {offsets = [2, 0, 0], sizes = [1, 8, 512], strides = [1, 1, 1]} : vector<8x8x512xf32> to vector<1x8x512xf32>
    %78 = vector.shape_cast %77 : vector<1x8x512xf32> to vector<8x512xf32>
    %cst_22 = arith.constant dense<0.000000e+00> : vector<8x512xf32>
    %79 = tpu.matmul %73, %10, %cst_22 {dimension_numbers = #tpu.dot_dimension_numbers<[1], [0], [0], [1], [0, 0, 1, 1], [], []>} : vector<8x128xf32>, vector<128x512xf32>, vector<8x512xf32> -> vector<8x512xf32>
    %80 = arith.addf %78, %79 : vector<8x512xf32>
    %81 = vector.extract_strided_slice %80 {offsets = [0, 0], sizes = [8, 128], strides = [1, 1]} : vector<8x512xf32> to vector<8x128xf32>
    %82 = arith.negf %81 : vector<8x128xf32>
    %83 = math.exp %82 : vector<8x128xf32>
    %cst_23 = arith.constant 1.000000e+00 : f32
    %84 = vector.broadcast %cst_23 : f32 to vector<8x128xf32>
    %85 = arith.addf %84, %83 : vector<8x128xf32>
    %86 = arith.divf %84, %85 : vector<8x128xf32>
    %87 = vector.extract_strided_slice %80 {offsets = [0, 128], sizes = [8, 128], strides = [1, 1]} : vector<8x512xf32> to vector<8x128xf32>
    %88 = arith.negf %87 : vector<8x128xf32>
    %89 = math.exp %88 : vector<8x128xf32>
    %cst_24 = arith.constant 1.000000e+00 : f32
    %90 = vector.broadcast %cst_24 : f32 to vector<8x128xf32>
    %91 = arith.addf %90, %89 : vector<8x128xf32>
    %92 = arith.divf %90, %91 : vector<8x128xf32>
    %93 = vector.extract_strided_slice %80 {offsets = [0, 256], sizes = [8, 128], strides = [1, 1]} : vector<8x512xf32> to vector<8x128xf32>
    %94 = math.tanh %93 : vector<8x128xf32>
    %95 = vector.extract_strided_slice %80 {offsets = [0, 384], sizes = [8, 128], strides = [1, 1]} : vector<8x512xf32> to vector<8x128xf32>
    %96 = arith.negf %95 : vector<8x128xf32>
    %97 = math.exp %96 : vector<8x128xf32>
    %cst_25 = arith.constant 1.000000e+00 : f32
    %98 = vector.broadcast %cst_25 : f32 to vector<8x128xf32>
    %99 = arith.addf %98, %97 : vector<8x128xf32>
    %100 = arith.divf %98, %99 : vector<8x128xf32>
    %101 = arith.mulf %92, %71 : vector<8x128xf32>
    %102 = arith.mulf %86, %94 : vector<8x128xf32>
    %103 = arith.addf %101, %102 : vector<8x128xf32>
    %104 = math.tanh %103 : vector<8x128xf32>
    %105 = arith.mulf %100, %104 : vector<8x128xf32>
    %c2 = arith.constant 2 : index
    %c0_26 = arith.constant 0 : index
    %c0_27 = arith.constant 0 : index
    %106 = vector.load %arg5[%c2, %c0_26, %c0_27] : memref<8x8x128xf32, #tpu.memory_space<vmem>>, vector<1x8x128xf32>
    %107 = vector.shape_cast %106 : vector<1x8x128xf32> to vector<8x128xf32>
    %108 = vector.shape_cast %105 : vector<8x128xf32> to vector<1x8x128xf32>
    tpu.vector_store %arg5[%c2, %c0_26, %c0_27], %108 {strides = array<i32>} : memref<8x8x128xf32, #tpu.memory_space<vmem>>, vector<1x8x128xf32>,
    %109 = vector.extract_strided_slice %9 {offsets = [3, 0, 0], sizes = [1, 8, 512], strides = [1, 1, 1]} : vector<8x8x512xf32> to vector<1x8x512xf32>
    %110 = vector.shape_cast %109 : vector<1x8x512xf32> to vector<8x512xf32>
    %cst_28 = arith.constant dense<0.000000e+00> : vector<8x512xf32>
    %111 = tpu.matmul %105, %10, %cst_28 {dimension_numbers = #tpu.dot_dimension_numbers<[1], [0], [0], [1], [0, 0, 1, 1], [], []>} : vector<8x128xf32>, vector<128x512xf32>, vector<8x512xf32> -> vector<8x512xf32>
    %112 = arith.addf %110, %111 : vector<8x512xf32>
    %113 = vector.extract_strided_slice %112 {offsets = [0, 0], sizes = [8, 128], strides = [1, 1]} : vector<8x512xf32> to vector<8x128xf32>
    %114 = arith.negf %113 : vector<8x128xf32>
    %115 = math.exp %114 : vector<8x128xf32>
    %cst_29 = arith.constant 1.000000e+00 : f32
    %116 = vector.broadcast %cst_29 : f32 to vector<8x128xf32>
    %117 = arith.addf %116, %115 : vector<8x128xf32>
    %118 = arith.divf %116, %117 : vector<8x128xf32>
    %119 = vector.extract_strided_slice %112 {offsets = [0, 128], sizes = [8, 128], strides = [1, 1]} : vector<8x512xf32> to vector<8x128xf32>
    %120 = arith.negf %119 : vector<8x128xf32>
    %121 = math.exp %120 : vector<8x128xf32>
    %cst_30 = arith.constant 1.000000e+00 : f32
    %122 = vector.broadcast %cst_30 : f32 to vector<8x128xf32>
    %123 = arith.addf %122, %121 : vector<8x128xf32>
    %124 = arith.divf %122, %123 : vector<8x128xf32>
    %125 = vector.extract_strided_slice %112 {offsets = [0, 256], sizes = [8, 128], strides = [1, 1]} : vector<8x512xf32> to vector<8x128xf32>
    %126 = math.tanh %125 : vector<8x128xf32>
    %127 = vector.extract_strided_slice %112 {offsets = [0, 384], sizes = [8, 128], strides = [1, 1]} : vector<8x512xf32> to vector<8x128xf32>
    %128 = arith.negf %127 : vector<8x128xf32>
    %129 = math.exp %128 : vector<8x128xf32>
    %cst_31 = arith.constant 1.000000e+00 : f32
    %130 = vector.broadcast %cst_31 : f32 to vector<8x128xf32>
    %131 = arith.addf %130, %129 : vector<8x128xf32>
    %132 = arith.divf %130, %131 : vector<8x128xf32>
    %133 = arith.mulf %124, %103 : vector<8x128xf32>
    %134 = arith.mulf %118, %126 : vector<8x128xf32>
    %135 = arith.addf %133, %134 : vector<8x128xf32>
    %136 = math.tanh %135 : vector<8x128xf32>
    %137 = arith.mulf %132, %136 : vector<8x128xf32>
    %c3 = arith.constant 3 : index
    %c0_32 = arith.constant 0 : index
    %c0_33 = arith.constant 0 : index
    %138 = vector.load %arg5[%c3, %c0_32, %c0_33] : memref<8x8x128xf32, #tpu.memory_space<vmem>>, vector<1x8x128xf32>
    %139 = vector.shape_cast %138 : vector<1x8x128xf32> to vector<8x128xf32>
    %140 = vector.shape_cast %137 : vector<8x128xf32> to vector<1x8x128xf32>
    tpu.vector_store %arg5[%c3, %c0_32, %c0_33], %140 {strides = array<i32>} : memref<8x8x128xf32, #tpu.memory_space<vmem>>, vector<1x8x128xf32>,
    %141 = vector.extract_strided_slice %9 {offsets = [4, 0, 0], sizes = [1, 8, 512], strides = [1, 1, 1]} : vector<8x8x512xf32> to vector<1x8x512xf32>
    %142 = vector.shape_cast %141 : vector<1x8x512xf32> to vector<8x512xf32>
    %cst_34 = arith.constant dense<0.000000e+00> : vector<8x512xf32>
    %143 = tpu.matmul %137, %10, %cst_34 {dimension_numbers = #tpu.dot_dimension_numbers<[1], [0], [0], [1], [0, 0, 1, 1], [], []>} : vector<8x128xf32>, vector<128x512xf32>, vector<8x512xf32> -> vector<8x512xf32>
    %144 = arith.addf %142, %143 : vector<8x512xf32>
    %145 = vector.extract_strided_slice %144 {offsets = [0, 0], sizes = [8, 128], strides = [1, 1]} : vector<8x512xf32> to vector<8x128xf32>
    %146 = arith.negf %145 : vector<8x128xf32>
    %147 = math.exp %146 : vector<8x128xf32>
    %cst_35 = arith.constant 1.000000e+00 : f32
    %148 = vector.broadcast %cst_35 : f32 to vector<8x128xf32>
    %149 = arith.addf %148, %147 : vector<8x128xf32>
    %150 = arith.divf %148, %149 : vector<8x128xf32>
    %151 = vector.extract_strided_slice %144 {offsets = [0, 128], sizes = [8, 128], strides = [1, 1]} : vector<8x512xf32> to vector<8x128xf32>
    %152 = arith.negf %151 : vector<8x128xf32>
    %153 = math.exp %152 : vector<8x128xf32>
    %cst_36 = arith.constant 1.000000e+00 : f32
    %154 = vector.broadcast %cst_36 : f32 to vector<8x128xf32>
    %155 = arith.addf %154, %153 : vector<8x128xf32>
    %156 = arith.divf %154, %155 : vector<8x128xf32>
    %157 = vector.extract_strided_slice %144 {offsets = [0, 256], sizes = [8, 128], strides = [1, 1]} : vector<8x512xf32> to vector<8x128xf32>
    %158 = math.tanh %157 : vector<8x128xf32>
    %159 = vector.extract_strided_slice %144 {offsets = [0, 384], sizes = [8, 128], strides = [1, 1]} : vector<8x512xf32> to vector<8x128xf32>
    %160 = arith.negf %159 : vector<8x128xf32>
    %161 = math.exp %160 : vector<8x128xf32>
    %cst_37 = arith.constant 1.000000e+00 : f32
    %162 = vector.broadcast %cst_37 : f32 to vector<8x128xf32>
    %163 = arith.addf %162, %161 : vector<8x128xf32>
    %164 = arith.divf %162, %163 : vector<8x128xf32>
    %165 = arith.mulf %156, %135 : vector<8x128xf32>
    %166 = arith.mulf %150, %158 : vector<8x128xf32>
    %167 = arith.addf %165, %166 : vector<8x128xf32>
    %168 = math.tanh %167 : vector<8x128xf32>
    %169 = arith.mulf %164, %168 : vector<8x128xf32>
    %c4 = arith.constant 4 : index
    %c0_38 = arith.constant 0 : index
    %c0_39 = arith.constant 0 : index
    %170 = vector.load %arg5[%c4, %c0_38, %c0_39] : memref<8x8x128xf32, #tpu.memory_space<vmem>>, vector<1x8x128xf32>
    %171 = vector.shape_cast %170 : vector<1x8x128xf32> to vector<8x128xf32>
    %172 = vector.shape_cast %169 : vector<8x128xf32> to vector<1x8x128xf32>
    tpu.vector_store %arg5[%c4, %c0_38, %c0_39], %172 {strides = array<i32>} : memref<8x8x128xf32, #tpu.memory_space<vmem>>, vector<1x8x128xf32>,
    %173 = vector.extract_strided_slice %9 {offsets = [5, 0, 0], sizes = [1, 8, 512], strides = [1, 1, 1]} : vector<8x8x512xf32> to vector<1x8x512xf32>
    %174 = vector.shape_cast %173 : vector<1x8x512xf32> to vector<8x512xf32>
    %cst_40 = arith.constant dense<0.000000e+00> : vector<8x512xf32>
    %175 = tpu.matmul %169, %10, %cst_40 {dimension_numbers = #tpu.dot_dimension_numbers<[1], [0], [0], [1], [0, 0, 1, 1], [], []>} : vector<8x128xf32>, vector<128x512xf32>, vector<8x512xf32> -> vector<8x512xf32>
    %176 = arith.addf %174, %175 : vector<8x512xf32>
    %177 = vector.extract_strided_slice %176 {offsets = [0, 0], sizes = [8, 128], strides = [1, 1]} : vector<8x512xf32> to vector<8x128xf32>
    %178 = arith.negf %177 : vector<8x128xf32>
    %179 = math.exp %178 : vector<8x128xf32>
    %cst_41 = arith.constant 1.000000e+00 : f32
    %180 = vector.broadcast %cst_41 : f32 to vector<8x128xf32>
    %181 = arith.addf %180, %179 : vector<8x128xf32>
    %182 = arith.divf %180, %181 : vector<8x128xf32>
    %183 = vector.extract_strided_slice %176 {offsets = [0, 128], sizes = [8, 128], strides = [1, 1]} : vector<8x512xf32> to vector<8x128xf32>
    %184 = arith.negf %183 : vector<8x128xf32>
    %185 = math.exp %184 : vector<8x128xf32>
    %cst_42 = arith.constant 1.000000e+00 : f32
    %186 = vector.broadcast %cst_42 : f32 to vector<8x128xf32>
    %187 = arith.addf %186, %185 : vector<8x128xf32>
    %188 = arith.divf %186, %187 : vector<8x128xf32>
    %189 = vector.extract_strided_slice %176 {offsets = [0, 256], sizes = [8, 128], strides = [1, 1]} : vector<8x512xf32> to vector<8x128xf32>
    %190 = math.tanh %189 : vector<8x128xf32>
    %191 = vector.extract_strided_slice %176 {offsets = [0, 384], sizes = [8, 128], strides = [1, 1]} : vector<8x512xf32> to vector<8x128xf32>
    %192 = arith.negf %191 : vector<8x128xf32>
    %193 = math.exp %192 : vector<8x128xf32>
    %cst_43 = arith.constant 1.000000e+00 : f32
    %194 = vector.broadcast %cst_43 : f32 to vector<8x128xf32>
    %195 = arith.addf %194, %193 : vector<8x128xf32>
    %196 = arith.divf %194, %195 : vector<8x128xf32>
    %197 = arith.mulf %188, %167 : vector<8x128xf32>
    %198 = arith.mulf %182, %190 : vector<8x128xf32>
    %199 = arith.addf %197, %198 : vector<8x128xf32>
    %200 = math.tanh %199 : vector<8x128xf32>
    %201 = arith.mulf %196, %200 : vector<8x128xf32>
    %c5 = arith.constant 5 : index
    %c0_44 = arith.constant 0 : index
    %c0_45 = arith.constant 0 : index
    %202 = vector.load %arg5[%c5, %c0_44, %c0_45] : memref<8x8x128xf32, #tpu.memory_space<vmem>>, vector<1x8x128xf32>
    %203 = vector.shape_cast %202 : vector<1x8x128xf32> to vector<8x128xf32>
    %204 = vector.shape_cast %201 : vector<8x128xf32> to vector<1x8x128xf32>
    tpu.vector_store %arg5[%c5, %c0_44, %c0_45], %204 {strides = array<i32>} : memref<8x8x128xf32, #tpu.memory_space<vmem>>, vector<1x8x128xf32>,
    %205 = vector.extract_strided_slice %9 {offsets = [6, 0, 0], sizes = [1, 8, 512], strides = [1, 1, 1]} : vector<8x8x512xf32> to vector<1x8x512xf32>
    %206 = vector.shape_cast %205 : vector<1x8x512xf32> to vector<8x512xf32>
    %cst_46 = arith.constant dense<0.000000e+00> : vector<8x512xf32>
    %207 = tpu.matmul %201, %10, %cst_46 {dimension_numbers = #tpu.dot_dimension_numbers<[1], [0], [0], [1], [0, 0, 1, 1], [], []>} : vector<8x128xf32>, vector<128x512xf32>, vector<8x512xf32> -> vector<8x512xf32>
    %208 = arith.addf %206, %207 : vector<8x512xf32>
    %209 = vector.extract_strided_slice %208 {offsets = [0, 0], sizes = [8, 128], strides = [1, 1]} : vector<8x512xf32> to vector<8x128xf32>
    %210 = arith.negf %209 : vector<8x128xf32>
    %211 = math.exp %210 : vector<8x128xf32>
    %cst_47 = arith.constant 1.000000e+00 : f32
    %212 = vector.broadcast %cst_47 : f32 to vector<8x128xf32>
    %213 = arith.addf %212, %211 : vector<8x128xf32>
    %214 = arith.divf %212, %213 : vector<8x128xf32>
    %215 = vector.extract_strided_slice %208 {offsets = [0, 128], sizes = [8, 128], strides = [1, 1]} : vector<8x512xf32> to vector<8x128xf32>
    %216 = arith.negf %215 : vector<8x128xf32>
    %217 = math.exp %216 : vector<8x128xf32>
    %cst_48 = arith.constant 1.000000e+00 : f32
    %218 = vector.broadcast %cst_48 : f32 to vector<8x128xf32>
    %219 = arith.addf %218, %217 : vector<8x128xf32>
    %220 = arith.divf %218, %219 : vector<8x128xf32>
    %221 = vector.extract_strided_slice %208 {offsets = [0, 256], sizes = [8, 128], strides = [1, 1]} : vector<8x512xf32> to vector<8x128xf32>
    %222 = math.tanh %221 : vector<8x128xf32>
    %223 = vector.extract_strided_slice %208 {offsets = [0, 384], sizes = [8, 128], strides = [1, 1]} : vector<8x512xf32> to vector<8x128xf32>
    %224 = arith.negf %223 : vector<8x128xf32>
    %225 = math.exp %224 : vector<8x128xf32>
    %cst_49 = arith.constant 1.000000e+00 : f32
    %226 = vector.broadcast %cst_49 : f32 to vector<8x128xf32>
    %227 = arith.addf %226, %225 : vector<8x128xf32>
    %228 = arith.divf %226, %227 : vector<8x128xf32>
    %229 = arith.mulf %220, %199 : vector<8x128xf32>
    %230 = arith.mulf %214, %222 : vector<8x128xf32>
    %231 = arith.addf %229, %230 : vector<8x128xf32>
    %232 = math.tanh %231 : vector<8x128xf32>
    %233 = arith.mulf %228, %232 : vector<8x128xf32>
    %c6 = arith.constant 6 : index
    %c0_50 = arith.constant 0 : index
    %c0_51 = arith.constant 0 : index
    %234 = vector.load %arg5[%c6, %c0_50, %c0_51] : memref<8x8x128xf32, #tpu.memory_space<vmem>>, vector<1x8x128xf32>
    %235 = vector.shape_cast %234 : vector<1x8x128xf32> to vector<8x128xf32>
    %236 = vector.shape_cast %233 : vector<8x128xf32> to vector<1x8x128xf32>
    tpu.vector_store %arg5[%c6, %c0_50, %c0_51], %236 {strides = array<i32>} : memref<8x8x128xf32, #tpu.memory_space<vmem>>, vector<1x8x128xf32>,
    %237 = vector.extract_strided_slice %9 {offsets = [7, 0, 0], sizes = [1, 8, 512], strides = [1, 1, 1]} : vector<8x8x512xf32> to vector<1x8x512xf32>
    %238 = vector.shape_cast %237 : vector<1x8x512xf32> to vector<8x512xf32>
    %cst_52 = arith.constant dense<0.000000e+00> : vector<8x512xf32>
    %239 = tpu.matmul %233, %10, %cst_52 {dimension_numbers = #tpu.dot_dimension_numbers<[1], [0], [0], [1], [0, 0, 1, 1], [], []>} : vector<8x128xf32>, vector<128x512xf32>, vector<8x512xf32> -> vector<8x512xf32>
    %240 = arith.addf %238, %239 : vector<8x512xf32>
    %241 = vector.extract_strided_slice %240 {offsets = [0, 0], sizes = [8, 128], strides = [1, 1]} : vector<8x512xf32> to vector<8x128xf32>
    %242 = arith.negf %241 : vector<8x128xf32>
    %243 = math.exp %242 : vector<8x128xf32>
    %cst_53 = arith.constant 1.000000e+00 : f32
    %244 = vector.broadcast %cst_53 : f32 to vector<8x128xf32>
    %245 = arith.addf %244, %243 : vector<8x128xf32>
    %246 = arith.divf %244, %245 : vector<8x128xf32>
    %247 = vector.extract_strided_slice %240 {offsets = [0, 128], sizes = [8, 128], strides = [1, 1]} : vector<8x512xf32> to vector<8x128xf32>
    %248 = arith.negf %247 : vector<8x128xf32>
    %249 = math.exp %248 : vector<8x128xf32>
    %cst_54 = arith.constant 1.000000e+00 : f32
    %250 = vector.broadcast %cst_54 : f32 to vector<8x128xf32>
    %251 = arith.addf %250, %249 : vector<8x128xf32>
    %252 = arith.divf %250, %251 : vector<8x128xf32>
    %253 = vector.extract_strided_slice %240 {offsets = [0, 256], sizes = [8, 128], strides = [1, 1]} : vector<8x512xf32> to vector<8x128xf32>
    %254 = math.tanh %253 : vector<8x128xf32>
    %255 = vector.extract_strided_slice %240 {offsets = [0, 384], sizes = [8, 128], strides = [1, 1]} : vector<8x512xf32> to vector<8x128xf32>
    %256 = arith.negf %255 : vector<8x128xf32>
    %257 = math.exp %256 : vector<8x128xf32>
    %cst_55 = arith.constant 1.000000e+00 : f32
    %258 = vector.broadcast %cst_55 : f32 to vector<8x128xf32>
    %259 = arith.addf %258, %257 : vector<8x128xf32>
    %260 = arith.divf %258, %259 : vector<8x128xf32>
    %261 = arith.mulf %252, %231 : vector<8x128xf32>
    %262 = arith.mulf %246, %254 : vector<8x128xf32>
    %263 = arith.addf %261, %262 : vector<8x128xf32>
    %264 = math.tanh %263 : vector<8x128xf32>
    %265 = arith.mulf %260, %264 : vector<8x128xf32>
    %c7 = arith.constant 7 : index
    %c0_56 = arith.constant 0 : index
    %c0_57 = arith.constant 0 : index
    %266 = vector.load %arg5[%c7, %c0_56, %c0_57] : memref<8x8x128xf32, #tpu.memory_space<vmem>>, vector<1x8x128xf32>
    %267 = vector.shape_cast %266 : vector<1x8x128xf32> to vector<8x128xf32>
    %268 = vector.shape_cast %265 : vector<8x128xf32> to vector<1x8x128xf32>
    tpu.vector_store %arg5[%c7, %c0_56, %c0_57], %268 {strides = array<i32>} : memref<8x8x128xf32, #tpu.memory_space<vmem>>, vector<1x8x128xf32>,
    return
  }
  func.func @transform_0(%arg0: i32) -> (i32, i32, i32) {
    %c0_i32 = arith.constant 0 : i32
    %c0_i32_0 = arith.constant 0 : i32
    %c0_i32_1 = arith.constant 0 : i32
    %c0_i32_2 = arith.constant 0 : i32
    return %c0_i32, %c0_i32_0, %c0_i32_1 : i32, i32, i32
  }
  func.func @transform_1(%arg0: i32) -> (i32, i32) {
    %c0_i32 = arith.constant 0 : i32
    %c0_i32_0 = arith.constant 0 : i32
    %c0_i32_1 = arith.constant 0 : i32
    return %c0_i32, %c0_i32_0 : i32, i32
  }
  func.func @transform_2(%arg0: i32) -> (i32, i32) {
    %c0_i32 = arith.constant 0 : i32
    %c0_i32_0 = arith.constant 0 : i32
    %c0_i32_1 = arith.constant 0 : i32
    return %c0_i32, %c0_i32_0 : i32, i32
  }
  func.func @transform_3(%arg0: i32) -> (i32, i32) {
    %c0_i32 = arith.constant 0 : i32
    %c0_i32_0 = arith.constant 0 : i32
    %c0_i32_1 = arith.constant 0 : i32
    return %c0_i32, %c0_i32_0 : i32, i32
  }
  func.func @transform_4(%arg0: i32) -> (i32, i32, i32) {
    %c0_i32 = arith.constant 0 : i32
    %c0_i32_0 = arith.constant 0 : i32
    %c0_i32_1 = arith.constant 0 : i32
    %c0_i32_2 = arith.constant 0 : i32
    return %c0_i32, %c0_i32_0, %c0_i32_1 : i32, i32, i32
  }
}

</mosaic_0001>

<bundles_post_ra>
// kernel: lstm_forward.1
= control target key start
LH: loop header
LB: loop body
LE: loop exit
PB: predicated region body
PF: predicated region fallthrough
CT: control target
= control target key end

     0   :  { %s3213_s0 = inlined_call_operand.vmem [shape: f32[8,8,1], index: 0, kind: input, shape index: {}]   ;;  %s3214_s1 = inlined_call_operand.vmem [shape: f32[1,512], index: 1, kind: input, shape index: {}]   ;;  %s3215_s2 = inlined_call_operand.vmem [shape: f32[128,512], index: 2, kind: input, shape index: {}]   ;;  %s3216_s3 = inlined_call_operand.vmem [shape: f32[1,512], index: 3, kind: input, shape index: {}]   ;;  %s3217_s4 = inlined_call_operand.hbm [shape: f32[8,8,128], index: 4, kind: output, shape index: {}]  }
   0x1   :  { %v1907_v0 = vld [vmem:[%s3215_s2 + $0x1e8] sm:$0xff]  ;;  %v1912_v1 = vld [vmem:[%s3215_s2 + $0x1f8] sm:$0xff]  ;;  %v1917_v2 = vld [vmem:[%s3215_s2 + $0x1e0] sm:$0xff] }
   0x2   :  { %3331 = vst [vmem:[#allocation5_spill] sm:$0xff] %v1907_v0  ;;  %3332 = vst [vmem:[#allocation6_spill] sm:$0xff] %v1912_v1  ;;  %238 = vmatprep.subr.mxu0 %v1907_v0  ;;  %309 = vmatprep.subr.mxu1 %v1912_v1  ;;  %v1924_v3 = vld [vmem:[%s3215_s2 + $0x1f0] sm:$0xff]  ;;  %v1929_v4 = vld [vmem:[%s3215_s2 + $0x1c8] sm:$0xff] }
   0x3   :  { %v1934_v5 = vld [vmem:[%s3215_s2 + $0x1d8] sm:$0xff]  ;;  %239 = vmatpush1.msra.mxu0 %v1917_v2  ;;  %310 = vmatpush1.msra.mxu1 %v1924_v3  ;;  %v1941_v6 = vld [vmem:[%s3215_s2 + $0x1c0] sm:$0xff]  ;;  %v1946_v7 = vld [vmem:[%s3215_s2 + $0x1d0] sm:$0xff] }
   0x4   :  { %v1951_v8 = vld [vmem:[%s3215_s2 + $0x1a8] sm:$0xff]  ;;  %240 = vmatprep.subr.mxu0 %v1929_v4  ;;  %311 = vmatprep.subr.mxu1 %v1934_v5  ;;  %v1958_v9 = vld [vmem:[%s3215_s2 + $0x1b8] sm:$0xff]  ;;  %v1963_v10 = vld [vmem:[%s3215_s2 + $0x1a0] sm:$0xff] }
   0x5   :  { %v1968_v11 = vld [vmem:[%s3215_s2 + $0x1b0] sm:$0xff]  ;;  %241 = vmatpush1.msra.mxu0 %v1941_v6  ;;  %312 = vmatpush1.msra.mxu1 %v1946_v7  ;;  %v1975_v12 = vld [vmem:[%s3215_s2 + $0x188] sm:$0xff]  ;;  %v1980_v13 = vld [vmem:[%s3215_s2 + $0x198] sm:$0xff] }
   0x6   :  { %242 = vmatprep.subr.mxu0 %v1951_v8  ;;  %313 = vmatprep.subr.mxu1 %v1958_v9  ;;  %v1987_v14 = vld [vmem:[%s3215_s2 + $0x180] sm:$0xff]  ;;  %v1992_v15 = vld [vmem:[%s3215_s2 + $0x190] sm:$0xff]  ;;  %v1999_v16 = vld [vmem:[%s3215_s2 + $0x168] sm:$0xff] }
   0x7   :  { %243 = vmatpush1.msra.mxu0 %v1963_v10  ;;  %314 = vmatpush1.msra.mxu1 %v1968_v11  ;;  %v2004_v17 = vld [vmem:[%s3215_s2 + $0x178] sm:$0xff]  ;;  %v2011_v18 = vld [vmem:[%s3215_s2 + $0x160] sm:$0xff]  ;;  %v2016_v19 = vld [vmem:[%s3215_s2 + $0x170] sm:$0xff] }
   0x8   :  { %244 = vmatprep.subr.mxu0 %v1975_v12  ;;  %315 = vmatprep.subr.mxu1 %v1980_v13  ;;  %v2023_v20 = vld [vmem:[%s3215_s2 + $0x148] sm:$0xff]  ;;  %v2028_v21 = vld [vmem:[%s3215_s2 + $0x158] sm:$0xff]  ;;  %v2035_v22 = vld [vmem:[%s3215_s2 + $0x140] sm:$0xff] }
   0x9   :  { %245 = vmatpush1.msra.mxu0 %v1987_v14  ;;  %316 = vmatpush1.msra.mxu1 %v1992_v15  ;;  %v2040_v23 = vld [vmem:[%s3215_s2 + $0x150] sm:$0xff]  ;;  %v2047_v24 = vld [vmem:[%s3215_s2 + $0x128] sm:$0xff]  ;;  %v2052_v25 = vld [vmem:[%s3215_s2 + $0x138] sm:$0xff] }
   0xa   :  { %246 = vmatprep.subr.mxu0 %v1999_v16  ;;  %317 = vmatprep.subr.mxu1 %v2004_v17  ;;  %v2059_v26 = vld [vmem:[%s3215_s2 + $0x120] sm:$0xff]  ;;  %v2064_v27 = vld [vmem:[%s3215_s2 + $0x130] sm:$0xff]  ;;  %v2071_v28 = vld [vmem:[%s3215_s2 + $0x108] sm:$0xff] }
   0xb   :  { %247 = vmatpush1.msra.mxu0 %v2011_v18  ;;  %318 = vmatpush1.msra.mxu1 %v2016_v19  ;;  %v2076_v29 = vld [vmem:[%s3215_s2 + $0x118] sm:$0xff]  ;;  %v2083_v30 = vld [vmem:[%s3215_s2 + $0x100] sm:$0xff]  ;;  %v2088_v31 = vld [vmem:[%s3215_s2 + $0x110] sm:$0xff] }
   0xc   :  { %248 = vmatprep.subr.mxu0 %v2023_v20  ;;  %319 = vmatprep.subr.mxu1 %v2028_v21  ;;  %v2095_v32 = vld [vmem:[%s3215_s2 + $0xe8] sm:$0xff]  ;;  %v2100_v33 = vld [vmem:[%s3215_s2 + $0xf8] sm:$0xff]  ;;  %v2107_v34 = vld [vmem:[%s3215_s2 + $0xe0] sm:$0xff] }
   0xd   :  { %249 = vmatpush1.msra.mxu0 %v2035_v22  ;;  %320 = vmatpush1.msra.mxu1 %v2040_v23  ;;  %v2112_v35 = vld [vmem:[%s3215_s2 + $0xf0] sm:$0xff]  ;;  %v2119_v36 = vld [vmem:[%s3215_s2 + $0xc8] sm:$0xff]  ;;  %v2124_v37 = vld [vmem:[%s3215_s2 + $0xd8] sm:$0xff] }
   0xe   :  { %250 = vmatprep.subr.mxu0 %v2047_v24  ;;  %321 = vmatprep.subr.mxu1 %v2052_v25  ;;  %v2131_v38 = vld [vmem:[%s3215_s2 + $0xc0] sm:$0xff]  ;;  %v2136_v39 = vld [vmem:[%s3215_s2 + $0xd0] sm:$0xff]  ;;  %v2143_v40 = vld [vmem:[%s3215_s2 + $0xa8] sm:$0xff] }
   0xf   :  { %251 = vmatpush1.msra.mxu0 %v2059_v26  ;;  %322 = vmatpush1.msra.mxu1 %v2064_v27  ;;  %v2148_v41 = vld [vmem:[%s3215_s2 + $0xb8] sm:$0xff]  ;;  %v2155_v42 = vld [vmem:[%s3215_s2 + $0xa0] sm:$0xff]  ;;  %v2160_v43 = vld [vmem:[%s3215_s2 + $0xb0] sm:$0xff] }
  0x10   :  { %252 = vmatprep.subr.mxu0 %v2071_v28  ;;  %323 = vmatprep.subr.mxu1 %v2076_v29  ;;  %3333 = vst [vmem:[#allocation7_spill] sm:$0xff] %v2155_v42  ;;  %3334 = vst [vmem:[#allocation8_spill] sm:$0xff] %v2160_v43  ;;  %v2167_v44 = vld [vmem:[%s3215_s2 + $0x88] sm:$0xff]  ;;  %v2172_v45 = vld [vmem:[%s3215_s2 + $0x98] sm:$0xff] }
  0x11   :  { %253 = vmatpush1.msra.mxu0 %v2083_v30  ;;  %324 = vmatpush1.msra.mxu1 %v2088_v31  ;;  %3335 = vst [vmem:[#allocation9_spill] sm:$0xff] %v2167_v44  ;;  %3336 = vst [vmem:[#allocation10_spill] sm:$0xff] %v2172_v45  ;;  %v2179_v46 = vld [vmem:[%s3215_s2 + $0x80] sm:$0xff]  ;;  %v2184_v47 = vld [vmem:[%s3215_s2 + $0x90] sm:$0xff] }
  0x12   :  { %254 = vmatprep.subr.mxu0 %v2095_v32  ;;  %325 = vmatprep.subr.mxu1 %v2100_v33  ;;  %3337 = vst [vmem:[#allocation11_spill] sm:$0xff] %v2179_v46  ;;  %3338 = vst [vmem:[#allocation12_spill] sm:$0xff] %v2184_v47  ;;  %v2191_v48 = vld [vmem:[%s3215_s2 + $0x68] sm:$0xff]  ;;  %v2196_v49 = vld [vmem:[%s3215_s2 + $0x78] sm:$0xff] }
  0x13   :  { %255 = vmatpush1.msra.mxu0 %v2107_v34  ;;  %326 = vmatpush1.msra.mxu1 %v2112_v35  ;;  %3339 = vst [vmem:[#allocation13_spill] sm:$0xff] %v2191_v48  ;;  %3340 = vst [vmem:[#allocation14_spill] sm:$0xff] %v2196_v49 }
  0x14   :  { %256 = vmatprep.subr.mxu0 %v2119_v36  ;;  %327 = vmatprep.subr.mxu1 %v2124_v37 }
  0x15   :  { %257 = vmatpush1.msra.mxu0 %v2131_v38  ;;  %328 = vmatpush1.msra.mxu1 %v2136_v39 }
  0x16   :  { %258 = vmatprep.subr.mxu0 %v2143_v40  ;;  %329 = vmatprep.subr.mxu1 %v2148_v41 }
  0x17   :  { %259 = vmatpush1.msra.mxu0 %v2155_v42  ;;  %330 = vmatpush1.msra.mxu1 %v2160_v43 }
  0x18   :  { %9 = vsyncpa [#allocation3], 0  ;;  %260 = vmatprep.subr.mxu0 %v2167_v44  ;;  %331 = vmatprep.subr.mxu1 %v2172_v45  ;;  %v2203_v50 = vld [vmem:[%s3215_s2 + $0x60] sm:$0xff]  ;;  %v2208_v51 = vld [vmem:[%s3215_s2 + $0x70] sm:$0xff] }
  0x19   :  { %3341 = vst [vmem:[#allocation15_spill] sm:$0xff] %v2203_v50  ;;  %3342 = vst [vmem:[#allocation16_spill] sm:$0xff] %v2208_v51  ;;  %261 = vmatpush1.msra.mxu0 %v2179_v46  ;;  %332 = vmatpush1.msra.mxu1 %v2184_v47  ;;  %v2215_v52 = vld [vmem:[%s3215_s2 + $0x48] sm:$0xff]  ;;  %v2220_v53 = vld [vmem:[%s3215_s2 + $0x58] sm:$0xff] }
  0x1a   :  { %3343 = vst [vmem:[#allocation17_spill] sm:$0xff] %v2215_v52  ;;  %3344 = vst [vmem:[#allocation18_spill] sm:$0xff] %v2220_v53  ;;  %262 = vmatprep.subr.mxu0 %v2191_v48  ;;  %333 = vmatprep.subr.mxu1 %v2196_v49  ;;  %v2227_v54 = vld [vmem:[%s3215_s2 + $0x40] sm:$0xff]  ;;  %v2232_v55 = vld [vmem:[%s3215_s2 + $0x50] sm:$0xff] }
  0x1b   :  { %3345 = vst [vmem:[#allocation19_spill] sm:$0xff] %v2227_v54  ;;  %3346 = vst [vmem:[#allocation20_spill] sm:$0xff] %v2232_v55  ;;  %263 = vmatpush1.msra.mxu0 %v2203_v50  ;;  %334 = vmatpush1.msra.mxu1 %v2208_v51  ;;  %v2239_v56 = vld [vmem:[%s3215_s2 + $0x28] sm:$0xff]  ;;  %v2244_v57 = vld [vmem:[%s3215_s2 + $0x38] sm:$0xff] }
  0x1c   :  { %3347 = vst [vmem:[#allocation21_spill] sm:$0xff] %v2239_v56  ;;  %3348 = vst [vmem:[#allocation22_spill] sm:$0xff] %v2244_v57  ;;  %264 = vmatprep.subr.mxu0 %v2215_v52  ;;  %335 = vmatprep.subr.mxu1 %v2220_v53  ;;  %v2251_v58 = vld [vmem:[%s3215_s2 + $0x20] sm:$0xff]  ;;  %v2256_v59 = vld [vmem:[%s3215_s2 + $0x30] sm:$0xff] }
  0x1d   :  { %3349 = vst [vmem:[#allocation23_spill] sm:$0xff] %v2251_v58  ;;  %3350 = vst [vmem:[#allocation24_spill] sm:$0xff] %v2256_v59  ;;  %265 = vmatpush1.msra.mxu0 %v2227_v54  ;;  %336 = vmatpush1.msra.mxu1 %v2232_v55  ;;  %v2263_v60 = vld [vmem:[%s3215_s2 + $0x8] sm:$0xff]  ;;  %v2268_v61 = vld [vmem:[%s3215_s2 + $0x18] sm:$0xff] }
  0x1e   :  { %3351 = vst [vmem:[#allocation25_spill] sm:$0xff] %v2263_v60  ;;  %3352 = vst [vmem:[#allocation26_spill] sm:$0xff] %v2268_v61  ;;  %266 = vmatprep.subr.mxu0 %v2239_v56  ;;  %337 = vmatprep.subr.mxu1 %v2244_v57  ;;  %v2275_v62 = vld [vmem:[%s3215_s2] sm:$0xff]  ;;  %v2282_v63 = vld [vmem:[%s3215_s2 + $0x10] sm:$0xff]  ;;  %v3237_v57 = vmov 0.0  }
  0x1f   :  { %3353 = vst [vmem:[#allocation27_spill] sm:$0xff] %v2275_v62  ;;  %267 = vmatpush1.msra.mxu0 %v2251_v58  ;;  %338 = vmatpush1.msra.mxu1 %v2256_v59  ;;  %3354 = vst [vmem:[#allocation28_spill] sm:$0xff] %v2282_v63  ;;  %v18_v59 = vld [vmem:[%s3213_s0] sm:$0xff] }
  0x20   :  { %268 = vmatprep.subr.mxu0 %v2263_v60  ;;  %339 = vmatprep.subr.mxu1 %v2268_v61  ;;  %v3226_v60 = vmov 0  }
  0x21   :  { %269 = vmatpush1.msra.mxu0 %v2275_v62  ;;  %302 = vmatprep.mubr.f32.mxu0 %v3237_v57 }
  0x22   :  { %340 = vmatpush1.msra.mxu1 %v2282_v63  ;;  %373 = vmatprep.mubr.f32.mxu1 %v3237_v57  ;;  %v19_v63 = vld [vmem:[%s3213_s0 + $0x8] sm:$0xff] }
  0x23   :  { %303 = vmatmul.mubr.f32.vlgmr.msra.gmra.mxu0 %v3237_v57  ;;  %374 = vmatmul.mubr.f32.vlgmr.msra.gmra.mxu1 %v3237_v57 }
  0x24   :  { %1658 = vset.pattern.permute.xlu0 %v3226_v60  ;;  %409 = vmatprep.subr.mxu0 %v1907_v0 }
  0x25   :  { %29 = vperm.xlu0 %1658, %v18_v59   ;;  %480 = vmatprep.subr.mxu1 %v1912_v1  ;;  %v22_v59 = vld [vmem:[%s3213_s0 + $0x20] sm:$0xff] }
  0x26   :  { %410 = vmatpush1.msra.mxu0 %v1917_v2  ;;  %481 = vmatpush1.msra.mxu1 %v1924_v3  ;;  %v3357_v60 = vld [vmem:[#allocation25_spill] sm:$0xff] }
  0x27   :  { %411 = vmatprep.subr.mxu0 %v1929_v4  ;;  %482 = vmatprep.subr.mxu1 %v1934_v5 }
  0x28   :  { %412 = vmatpush1.msra.mxu0 %v1941_v6  ;;  %483 = vmatpush1.msra.mxu1 %v1946_v7 }
  0x29   :  { %34 = vperm.xlu0 %1658, %v19_v63   ;;  %413 = vmatprep.subr.mxu0 %v1951_v8  ;;  %v24_v63 = vld [vmem:[%s3213_s0 + $0x30] sm:$0xff] }
  0x2a   :  { %484 = vmatprep.subr.mxu1 %v1958_v9  ;;  %414 = vmatpush1.msra.mxu0 %v1963_v10 }
  0x2b   :  { %485 = vmatpush1.msra.mxu1 %v1968_v11  ;;  %415 = vmatprep.subr.mxu0 %v1975_v12 }
  0x2c   :  { %486 = vmatprep.subr.mxu1 %v1980_v13  ;;  %416 = vmatpush1.msra.mxu0 %v1987_v14 }
  0x2d   :  { %49 = vperm.xlu0 %1658, %v22_v59   ;;  %487 = vmatpush1.msra.mxu1 %v1992_v15  ;;  %v3355_v59 = vld [vmem:[#allocation22_spill] sm:$0xff] }
  0x2e   :  { %417 = vmatprep.subr.mxu0 %v1999_v16  ;;  %488 = vmatprep.subr.mxu1 %v2004_v17 }
  0x2f   :  { %418 = vmatpush1.msra.mxu0 %v2011_v18  ;;  %489 = vmatpush1.msra.mxu1 %v2016_v19 }
  0x30   :  { %419 = vmatprep.subr.mxu0 %v2023_v20  ;;  %490 = vmatprep.subr.mxu1 %v2028_v21 }
  0x31   :  { %59 = vperm.xlu0 %1658, %v24_v63   ;;  %420 = vmatpush1.msra.mxu0 %v2035_v22  ;;  %v3356_v63 = vld [vmem:[#allocation24_spill] sm:$0xff] }
  0x32   :  { %491 = vmatpush1.msra.mxu1 %v2040_v23  ;;  %421 = vmatprep.subr.mxu0 %v2047_v24 }
  0x33   :  { %492 = vmatprep.subr.mxu1 %v2052_v25  ;;  %422 = vmatpush1.msra.mxu0 %v2059_v26 }
  0x34   :  { %493 = vmatpush1.msra.mxu1 %v2064_v27  ;;  %423 = vmatprep.subr.mxu0 %v2071_v28 }
  0x35   :  { %494 = vmatprep.subr.mxu1 %v2076_v29  ;;  %424 = vmatpush1.msra.mxu0 %v2083_v30 }
  0x36   :  { %495 = vmatpush1.msra.mxu1 %v2088_v31  ;;  %425 = vmatprep.subr.mxu0 %v2095_v32 }
  0x37   :  { %496 = vmatprep.subr.mxu1 %v2100_v33  ;;  %426 = vmatpush1.msra.mxu0 %v2107_v34 }
  0x38   :  { %497 = vmatpush1.msra.mxu1 %v2112_v35  ;;  %427 = vmatprep.subr.mxu0 %v2119_v36 }
  0x39   :  { %498 = vmatprep.subr.mxu1 %v2124_v37  ;;  %428 = vmatpush1.msra.mxu0 %v2131_v38 }
  0x3a   :  { %499 = vmatpush1.msra.mxu1 %v2136_v39  ;;  %429 = vmatprep.subr.mxu0 %v2143_v40 }
  0x3b   :  { %500 = vmatprep.subr.mxu1 %v2148_v41  ;;  %430 = vmatpush1.msra.mxu0 %v2155_v42 }
  0x3c   :  { %501 = vmatpush1.msra.mxu1 %v2160_v43  ;;  %431 = vmatprep.subr.mxu0 %v2167_v44 }
  0x3d   :  { %502 = vmatprep.subr.mxu1 %v2172_v45  ;;  %432 = vmatpush1.msra.mxu0 %v2179_v46 }
  0x3e   :  { %503 = vmatpush1.msra.mxu1 %v2184_v47  ;;  %433 = vmatprep.subr.mxu0 %v2191_v48 }
  0x3f   :  { %504 = vmatprep.subr.mxu1 %v2196_v49  ;;  %434 = vmatpush1.msra.mxu0 %v2203_v50 }
  0x40   :  { %505 = vmatpush1.msra.mxu1 %v2208_v51  ;;  %435 = vmatprep.subr.mxu0 %v2215_v52 }
  0x41   :  { %506 = vmatprep.subr.mxu1 %v2220_v53  ;;  %436 = vmatpush1.msra.mxu0 %v2227_v54  ;;  %v3358_v53 = vld [vmem:[#allocation28_spill] sm:$0xff] }
  0x42   :  { %507 = vmatpush1.msra.mxu1 %v2232_v55  ;;  %437 = vmatprep.subr.mxu0 %v2239_v56 }
  0x43   :  { %508 = vmatprep.subr.mxu1 %v3355_v59  ;;  %438 = vmatpush1.msra.mxu0 %v2251_v58  ;;  %v3359_v59 = vmov 0   ;;  %v68_v58 = vlaneseq }
  0x44   :  { %509 = vmatpush1.msra.mxu1 %v3356_v63  ;;  %439 = vmatprep.subr.mxu0 %v3357_v60 }
  0x45   :  { %510 = vmatprep.subr.mxu1 %v2268_v61  ;;  %440 = vmatpush1.msra.mxu0 %v2275_v62  ;;  %v69_v63 = vshrl.u32 %v68_v58, 7  ;;  %v26_v61 = vld [vmem:[%s3214_s1] sm:$0xf] }
  0x46   :  { %473 = vmatprep.mubr.f32.mxu0 %v3237_v57  ;;  %511 = vmatpush1.msra.mxu1 %v3358_v53 }
  0x47   :  { %544 = vmatprep.mubr.f32.mxu1 %v3237_v57  ;;  %581 = vmatprep.subr.mxu0 %v1907_v0  ;;  %v70_v56 = vsub.s32 0, %v69_v63  ;;  %v74_v62 = vsub.s32 1, %v69_v63  ;;  %v120_v57 = vld [vmem:[%s3216_s3] sm:$0xf]  ;;  %v82_v54 = vsub.s32 3, %v69_v63  ;;  %v78_v47 = vsub.s32 2, %v69_v63 }
  0x48   :  { %652 = vmatprep.subr.mxu1 %v1912_v1  ;;  %1659 = vset.pattern.permute.xlu1 %v3359_v59 }
  0x49   :  { %v2377_v60 = vrot.slane %v26_v61, %v70_v56  ;;  %v2382_v53 = vrot.slane %v26_v61, %v74_v62  ;;  %v2385_v59 = vrot.slane %v120_v57, %v70_v56  ;;  %v2388_v55 = vrot.slane %v120_v57, %v74_v62 }
  0x4a   :  { %v2392_v50 = vrot.slane %v26_v61, %v82_v54  ;;  %v2397_v43 = vrot.slane %v26_v61, %v78_v47 }
  0x4b   :  { %3360 = vst [vmem:[#allocation29_spill] sm:$0xff] %v2377_v60  ;;  %3361 = vst [vmem:[#allocation30_spill] sm:$0xff] %v2382_v53 }
  0x4c   :  { %3362 = vst [vmem:[#allocation31_spill] sm:$0xff] %v2388_v55 }
  0xa0   :  { %v30_v0 = vpop.permute.xlu0 %29 }
  0xa1   :  { %v88_v1 = vmul.f32 %v2377_v60, %v30_v0  ;;  %v89_v58 = vmul.f32 %v2382_v53, %v30_v0  ;;  %v91_v56 = vmul.f32 %v2392_v50, %v30_v0  ;;  %v2395_v60 = vrot.slane %v120_v57, %v82_v54 }
  0xa3   :  { %v142_v52 = vadd.f32 %v2385_v59, %v88_v1  ;;  %v143_v51 = vadd.f32 %v2388_v55, %v89_v58  ;;  %3363 = vst [vmem:[#allocation32_spill] sm:$0xff] %v2395_v60  ;;  %v145_v1 = vadd.f32 %v2395_v60, %v91_v56  ;;  %v90_v55 = vmul.f32 %v2397_v43, %v30_v0 }
  0xe3   :  { %v304_v49 = vpop.f32.mrf.mxu0  ;;  %v375_v62 = vpop.f32.mrf.mxu1 }
  0xe4   :  { %v380_v48 = vadd.f32 %v304_v49, %v142_v52  ;;  %v2401_v49 = vrot.slane %v120_v57, %v78_v47 }
  0xe5   :  { %v306_v46 = vpop.f32.mrf.mxu0  ;;  %v377_v58 = vpop.f32.mrf.mxu1 }
  0xe6   :  { %v1629_v45 = vmul.f32 -1.442695, %v380_v48  ;;  %v381_v44 = vadd.f32 %v306_v46, %v143_v51  ;;  %v383_v52 = vadd.f32 %v377_v58, %v145_v1  ;;  %v144_v46 = vadd.f32 %v2401_v49, %v90_v55 }
  0xe8   :  { %1660 = vpow2.f32 %v1629_v45  ;;  %v1630_v53 = vmul.f32 -1.442695, %v381_v44  ;;  %v1631_v48 = vmul.f32 -1.442695, %v383_v52  ;;  %v382_v54 = vadd.f32 %v375_v62, %v144_v46  ;;  %v3365_v52 = vld [vmem:[#allocation9_spill] sm:$0xff]  ;;  %v3366_v46 = vld [vmem:[#allocation10_spill] sm:$0xff] }
  0xea   :  { %1662 = vpow2.f32 %v1630_v53 }
  0xeb   :  { %1664 = vpow2.f32 %v1631_v48  ;;  %v3367_v48 = vld [vmem:[#allocation11_spill] sm:$0xff] }
  0xf5   :  { %v1661_v51 = vpop.eup %1660 }
  0xf6   :  { %v387_v63 = vadd.f32 1.0, %v1661_v51  ;;  %v3368_v51 = vld [vmem:[#allocation12_spill] sm:$0xff] }
  0xf7   :  { %v1663_v45 = vpop.eup %1662 }
  0xf8   :  { %1666 = vrcp.f32 %v387_v63  ;;  %v393_v44 = vadd.f32 1.0, %v1663_v45  ;;  %v1665_v53 = vpop.eup %1664  ;;  %v3370_v63 = vld [vmem:[#allocation14_spill] sm:$0xff]  ;;  %v3371_v45 = vld [vmem:[#allocation15_spill] sm:$0xff] }
  0xf9   :  { %1668 = vtanh.f32 %v382_v54  ;;  %v400_v0 = vadd.f32 1.0, %v1665_v53  ;;  %v3369_v54 = vld [vmem:[#allocation13_spill] sm:$0xff] }
  0xfa   :  { %1670 = vrcp.f32 %v393_v44  ;;  %v3372_v44 = vld [vmem:[#allocation16_spill] sm:$0xff]  ;;  %v3373_v53 = vld [vmem:[#allocation17_spill] sm:$0xff] }
  0xfb   :  { %1672 = vrcp.f32 %v400_v0  ;;  %v3376_v0 = vld [vmem:[#allocation20_spill] sm:$0xff] }
 0x105   :  { %v1667_v61 = vpop.eup %1666 }
 0x106   :  { %v1669_v56 = vpop.eup %1668 }
 0x107   :  { %v1671_v60 = vpop.eup %1670  ;;  %v404_v57 = vmul.f32 %v1669_v56, %v1667_v61  ;;  %v3374_v61 = vld [vmem:[#allocation18_spill] sm:$0xff]  ;;  %v3375_v56 = vld [vmem:[#allocation19_spill] sm:$0xff] }
 0x108   :  { %v403_v47 = vmul.f32 0.0, %v1671_v60  ;;  %v1673_v55 = vpop.eup %1672  ;;  %v3364_v60 = vld [vmem:[#allocation8_spill] sm:$0xff] }
 0x10a   :  { %v2404_v1 = vadd.f32 %v404_v57, %v403_v47  ;;  %v3377_v47 = vld [vmem:[#allocation21_spill] sm:$0xff]  ;;  %v3378_v57 = vld [vmem:[#allocation22_spill] sm:$0xff] }
 0x10c   :  { %1674 = vtanh.f32 %v2404_v1 }
 0x119   :  { %v1675_v62 = vpop.eup %1674 }
 0x11a   :  { %v407_v58 = vmul.f32 %v1675_v62, %v1673_v55  ;;  %v3379_v55 = vld [vmem:[#allocation23_spill] sm:$0xff]  ;;  %v3380_v62 = vld [vmem:[#allocation24_spill] sm:$0xff] }
 0x11c   :  { %408 = vst [vmem:[#allocation2] sm:$0xff] %v407_v58  ;;  %474 = vmatmul.mubr.f32.vlgmr.msra.gmra.mxu0 %v407_v58  ;;  %545 = vmatmul.mubr.f32.vlgmr.msra.gmra.mxu1 %v407_v58  ;;  %v3381_v58 = vld [vmem:[#allocation25_spill] sm:$0xff] }
 0x11d   :  { %582 = vmatpush1.msra.mxu0 %v1917_v2  ;;  %653 = vmatpush1.msra.mxu1 %v1924_v3 }
 0x11e   :  { %583 = vmatprep.subr.mxu0 %v1929_v4  ;;  %654 = vmatprep.subr.mxu1 %v1934_v5 }
 0x11f   :  { %584 = vmatpush1.msra.mxu0 %v1941_v6  ;;  %655 = vmatpush1.msra.mxu1 %v1946_v7 }
 0x120   :  { %585 = vmatprep.subr.mxu0 %v1951_v8  ;;  %656 = vmatprep.subr.mxu1 %v1958_v9 }
 0x121   :  { %586 = vmatpush1.msra.mxu0 %v1963_v10  ;;  %657 = vmatpush1.msra.mxu1 %v1968_v11 }
 0x122   :  { %587 = vmatprep.subr.mxu0 %v1975_v12  ;;  %658 = vmatprep.subr.mxu1 %v1980_v13 }
 0x123   :  { %588 = vmatpush1.msra.mxu0 %v1987_v14  ;;  %659 = vmatpush1.msra.mxu1 %v1992_v15 }
 0x124   :  { %589 = vmatprep.subr.mxu0 %v1999_v16  ;;  %660 = vmatprep.subr.mxu1 %v2004_v17 }
 0x125   :  { %590 = vmatpush1.msra.mxu0 %v2011_v18  ;;  %661 = vmatpush1.msra.mxu1 %v2016_v19 }
 0x126   :  { %591 = vmatprep.subr.mxu0 %v2023_v20  ;;  %662 = vmatprep.subr.mxu1 %v2028_v21 }
 0x127   :  { %592 = vmatpush1.msra.mxu0 %v2035_v22  ;;  %663 = vmatpush1.msra.mxu1 %v2040_v23 }
 0x128   :  { %593 = vmatprep.subr.mxu0 %v2047_v24  ;;  %664 = vmatprep.subr.mxu1 %v2052_v25 }
 0x129   :  { %594 = vmatpush1.msra.mxu0 %v2059_v26  ;;  %665 = vmatpush1.msra.mxu1 %v2064_v27 }
 0x12a   :  { %595 = vmatprep.subr.mxu0 %v2071_v28  ;;  %666 = vmatprep.subr.mxu1 %v2076_v29 }
 0x12b   :  { %596 = vmatpush1.msra.mxu0 %v2083_v30  ;;  %667 = vmatpush1.msra.mxu1 %v2088_v31 }
 0x12c   :  { %597 = vmatprep.subr.mxu0 %v2095_v32  ;;  %668 = vmatprep.subr.mxu1 %v2100_v33 }
 0x12d   :  { %598 = vmatpush1.msra.mxu0 %v2107_v34  ;;  %669 = vmatpush1.msra.mxu1 %v2112_v35 }
 0x12e   :  { %599 = vmatprep.subr.mxu0 %v2119_v36  ;;  %670 = vmatprep.subr.mxu1 %v2124_v37 }
 0x12f   :  { %600 = vmatpush1.msra.mxu0 %v2131_v38  ;;  %671 = vmatpush1.msra.mxu1 %v2136_v39 }
 0x130   :  { %601 = vmatprep.subr.mxu0 %v2143_v40  ;;  %672 = vmatprep.subr.mxu1 %v2148_v41 }
 0x131   :  { %602 = vmatpush1.msra.mxu0 %v2155_v42  ;;  %673 = vmatpush1.msra.mxu1 %v3364_v60  ;;  %v3391_v60 = vld [vmem:[#allocation32_spill] sm:$0xff] }
 0x132   :  { %603 = vmatprep.subr.mxu0 %v3365_v52  ;;  %674 = vmatprep.subr.mxu1 %v3366_v46 }
 0x133   :  { %604 = vmatpush1.msra.mxu0 %v3367_v48  ;;  %675 = vmatpush1.msra.mxu1 %v3368_v51 }
 0x134   :  { %605 = vmatprep.subr.mxu0 %v3369_v54  ;;  %676 = vmatprep.subr.mxu1 %v3370_v63 }
 0x135   :  { %606 = vmatpush1.msra.mxu0 %v3371_v45  ;;  %677 = vmatpush1.msra.mxu1 %v3372_v44  ;;  %v3382_v45 = vld [vmem:[#allocation26_spill] sm:$0xff]  ;;  %v3383_v44 = vld [vmem:[#allocation27_spill] sm:$0xff] }
 0x136   :  { %607 = vmatprep.subr.mxu0 %v3373_v53  ;;  %678 = vmatprep.subr.mxu1 %v3374_v61  ;;  %v3384_v53 = vmov 0.0   ;;  %v3385_v61 = vld [vmem:[#allocation28_spill] sm:$0xff] }
 0x137   :  { %608 = vmatpush1.msra.mxu0 %v3375_v56  ;;  %679 = vmatpush1.msra.mxu1 %v3376_v0  ;;  %v3386_v0 = vld [vmem:[#allocation5_spill] sm:$0xff] }
 0x138   :  { %609 = vmatprep.subr.mxu0 %v3377_v47  ;;  %680 = vmatprep.subr.mxu1 %v3378_v57  ;;  %v3387_v47 = vld [vmem:[#allocation6_spill] sm:$0xff] }
 0x139   :  { %610 = vmatpush1.msra.mxu0 %v3379_v55  ;;  %681 = vmatpush1.msra.mxu1 %v3380_v62  ;;  %v20_v62 = vld [vmem:[%s3213_s0 + $0x10] sm:$0xff] }
 0x13a   :  { %611 = vmatprep.subr.mxu0 %v3381_v58  ;;  %682 = vmatprep.subr.mxu1 %v3382_v45  ;;  %v21_v45 = vld [vmem:[%s3213_s0 + $0x18] sm:$0xff]  ;;  %v3389_v58 = vld [vmem:[#allocation30_spill] sm:$0xff] }
 0x13b   :  { %612 = vmatpush1.msra.mxu0 %v3383_v44  ;;  %645 = vmatprep.mubr.f32.mxu0 %v3384_v53 }
 0x13c   :  { %683 = vmatpush1.msra.mxu1 %v3385_v61  ;;  %716 = vmatprep.mubr.f32.mxu1 %v3384_v53  ;;  %v23_v61 = vld [vmem:[%s3213_s0 + $0x28] sm:$0xff]  ;;  %v3388_v53 = vld [vmem:[#allocation29_spill] sm:$0xff] }
 0x13d   :  { %753 = vmatprep.subr.mxu0 %v3386_v0  ;;  %824 = vmatprep.subr.mxu1 %v3387_v47  ;;  %v25_v0 = vld [vmem:[%s3213_s0 + $0x38] sm:$0xff]  ;;  %v35_v47 = vpop.permute.xlu0 %34 }
 0x13e   :  { %39 = vperm.xlu1 %1659, %v20_v62   ;;  %v92_v44 = vmul.f32 %v3388_v53, %v35_v47  ;;  %v93_v62 = vmul.f32 %v3389_v58, %v35_v47  ;;  %v95_v52 = vmul.f32 %v2392_v50, %v35_v47  ;;  %v94_v58 = vmul.f32 %v2397_v43, %v35_v47 }
 0x140   :  { %v146_v55 = vadd.f32 %v2385_v59, %v92_v44  ;;  %v149_v53 = vadd.f32 %v3391_v60, %v95_v52  ;;  %v148_v44 = vadd.f32 %v2401_v49, %v94_v58 }
 0x142   :  { %44 = vperm.xlu1 %1659, %v21_v45   ;;  %v3390_v45 = vld [vmem:[#allocation31_spill] sm:$0xff] }
 0x143   :  { %v147_v63 = vadd.f32 %v3390_v45, %v93_v62 }
 0x146   :  { %54 = vperm.xlu1 %1659, %v23_v61  }
 0x14a   :  { %64 = vperm.xlu1 %1659, %v25_v0  }
 0x1dc   :  { %v475_v57 = vpop.f32.mrf.mxu0  ;;  %v546_v61 = vpop.f32.mrf.mxu1 }
 0x1dd   :  { %v551_v56 = vadd.f32 %v475_v57, %v146_v55  ;;  %v553_v62 = vadd.f32 %v546_v61, %v148_v44  ;;  %v3396_v44 = vld [vmem:[#allocation11_spill] sm:$0xff] }
 0x1de   :  { %v477_v54 = vpop.f32.mrf.mxu0  ;;  %v548_v0 = vpop.f32.mrf.mxu1 }
 0x1df   :  { %v1632_v51 = vmul.f32 -1.442695, %v551_v56  ;;  %v552_v48 = vadd.f32 %v477_v54, %v147_v63  ;;  %v554_v42 = vadd.f32 %v548_v0, %v149_v53  ;;  %v3395_v0 = vld [vmem:[#allocation10_spill] sm:$0xff] }
 0x1e1   :  { %1676 = vpow2.f32 %v1632_v51  ;;  %v1633_v46 = vmul.f32 -1.442695, %v552_v48  ;;  %v1634_v57 = vmul.f32 -1.442695, %v554_v42 }
 0x1e3   :  { %1678 = vpow2.f32 %v1633_v46 }
 0x1e4   :  { %1680 = vpow2.f32 %v1634_v57  ;;  %v3397_v57 = vld [vmem:[#allocation12_spill] sm:$0xff] }
 0x1ee   :  { %v1677_v55 = vpop.eup %1676 }
 0x1ef   :  { %v558_v45 = vadd.f32 1.0, %v1677_v55  ;;  %v3398_v55 = vld [vmem:[#allocation13_spill] sm:$0xff] }
 0x1f0   :  { %v1679_v56 = vpop.eup %1678 }
 0x1f1   :  { %1682 = vrcp.f32 %v558_v45  ;;  %v564_v51 = vadd.f32 1.0, %v1679_v56  ;;  %v1681_v48 = vpop.eup %1680  ;;  %v3394_v45 = vld [vmem:[#allocation9_spill] sm:$0xff]  ;;  %v3400_v56 = vld [vmem:[#allocation15_spill] sm:$0xff] }
 0x1f2   :  { %1684 = vtanh.f32 %v553_v62  ;;  %v571_v52 = vadd.f32 1.0, %v1681_v48  ;;  %v3399_v62 = vld [vmem:[#allocation14_spill] sm:$0xff]  ;;  %v3402_v48 = vld [vmem:[#allocation17_spill] sm:$0xff] }
 0x1f3   :  { %1686 = vrcp.f32 %v564_v51  ;;  %v3401_v51 = vld [vmem:[#allocation16_spill] sm:$0xff] }
 0x1f4   :  { %1688 = vrcp.f32 %v571_v52  ;;  %v3406_v52 = vld [vmem:[#allocation21_spill] sm:$0xff] }
 0x1fe   :  { %v1683_v46 = vpop.eup %1682 }
 0x1ff   :  { %v1685_v54 = vpop.eup %1684 }
 0x200   :  { %v1687_v63 = vpop.eup %1686  ;;  %v575_v60 = vmul.f32 %v1685_v54, %v1683_v46  ;;  %v3403_v46 = vld [vmem:[#allocation18_spill] sm:$0xff]  ;;  %v3404_v54 = vld [vmem:[#allocation19_spill] sm:$0xff] }
 0x201   :  { %v574_v53 = vmul.f32 %v1687_v63, %v2404_v1  ;;  %v1689_v42 = vpop.eup %1688  ;;  %v3392_v1 = vld [vmem:[#allocation7_spill] sm:$0xff]  ;;  %v3405_v63 = vld [vmem:[#allocation20_spill] sm:$0xff] }
 0x203   :  { %v2494_v47 = vadd.f32 %v575_v60, %v574_v53  ;;  %v3393_v60 = vld [vmem:[#allocation8_spill] sm:$0xff]  ;;  %v3407_v53 = vld [vmem:[#allocation22_spill] sm:$0xff] }
 0x205   :  { %1690 = vtanh.f32 %v2494_v47 }
 0x212   :  { %v1691_v58 = vpop.eup %1690 }
 0x213   :  { %v578_v61 = vmul.f32 %v1691_v58, %v1689_v42  ;;  %v3408_v42 = vld [vmem:[#allocation23_spill] sm:$0xff]  ;;  %v3409_v58 = vld [vmem:[#allocation24_spill] sm:$0xff] }
 0x215   :  { %580 = vst [vmem:[#allocation2 + $0x8] sm:$0xff] %v578_v61  ;;  %646 = vmatmul.mubr.f32.vlgmr.msra.gmra.mxu0 %v578_v61  ;;  %717 = vmatmul.mubr.f32.vlgmr.msra.gmra.mxu1 %v578_v61  ;;  %v3410_v61 = vld [vmem:[#allocation25_spill] sm:$0xff] }
 0x216   :  { %754 = vmatpush1.msra.mxu0 %v1917_v2  ;;  %825 = vmatpush1.msra.mxu1 %v1924_v3 }
 0x217   :  { %755 = vmatprep.subr.mxu0 %v1929_v4  ;;  %826 = vmatprep.subr.mxu1 %v1934_v5 }
 0x218   :  { %756 = vmatpush1.msra.mxu0 %v1941_v6  ;;  %827 = vmatpush1.msra.mxu1 %v1946_v7 }
 0x219   :  { %757 = vmatprep.subr.mxu0 %v1951_v8  ;;  %828 = vmatprep.subr.mxu1 %v1958_v9 }
 0x21a   :  { %758 = vmatpush1.msra.mxu0 %v1963_v10  ;;  %829 = vmatpush1.msra.mxu1 %v1968_v11 }
 0x21b   :  { %759 = vmatprep.subr.mxu0 %v1975_v12  ;;  %830 = vmatprep.subr.mxu1 %v1980_v13 }
 0x21c   :  { %760 = vmatpush1.msra.mxu0 %v1987_v14  ;;  %831 = vmatpush1.msra.mxu1 %v1992_v15 }
 0x21d   :  { %761 = vmatprep.subr.mxu0 %v1999_v16  ;;  %832 = vmatprep.subr.mxu1 %v2004_v17 }
 0x21e   :  { %762 = vmatpush1.msra.mxu0 %v2011_v18  ;;  %833 = vmatpush1.msra.mxu1 %v2016_v19 }
 0x21f   :  { %763 = vmatprep.subr.mxu0 %v2023_v20  ;;  %834 = vmatprep.subr.mxu1 %v2028_v21 }
 0x220   :  { %764 = vmatpush1.msra.mxu0 %v2035_v22  ;;  %835 = vmatpush1.msra.mxu1 %v2040_v23 }
 0x221   :  { %765 = vmatprep.subr.mxu0 %v2047_v24  ;;  %836 = vmatprep.subr.mxu1 %v2052_v25 }
 0x222   :  { %766 = vmatpush1.msra.mxu0 %v2059_v26  ;;  %837 = vmatpush1.msra.mxu1 %v2064_v27 }
 0x223   :  { %767 = vmatprep.subr.mxu0 %v2071_v28  ;;  %838 = vmatprep.subr.mxu1 %v2076_v29 }
 0x224   :  { %768 = vmatpush1.msra.mxu0 %v2083_v30  ;;  %839 = vmatpush1.msra.mxu1 %v2088_v31 }
 0x225   :  { %769 = vmatprep.subr.mxu0 %v2095_v32  ;;  %840 = vmatprep.subr.mxu1 %v2100_v33 }
 0x226   :  { %770 = vmatpush1.msra.mxu0 %v2107_v34  ;;  %841 = vmatpush1.msra.mxu1 %v2112_v35 }
 0x227   :  { %771 = vmatprep.subr.mxu0 %v2119_v36  ;;  %842 = vmatprep.subr.mxu1 %v2124_v37 }
 0x228   :  { %772 = vmatpush1.msra.mxu0 %v2131_v38  ;;  %843 = vmatpush1.msra.mxu1 %v2136_v39 }
 0x229   :  { %773 = vmatprep.subr.mxu0 %v2143_v40  ;;  %844 = vmatprep.subr.mxu1 %v2148_v41 }
 0x22a   :  { %774 = vmatpush1.msra.mxu0 %v3392_v1  ;;  %845 = vmatpush1.msra.mxu1 %v3393_v60 }
 0x22b   :  { %775 = vmatprep.subr.mxu0 %v3394_v45  ;;  %846 = vmatprep.subr.mxu1 %v3395_v0 }
 0x22c   :  { %776 = vmatpush1.msra.mxu0 %v3396_v44  ;;  %847 = vmatpush1.msra.mxu1 %v3397_v57 }
 0x22d   :  { %777 = vmatprep.subr.mxu0 %v3398_v55  ;;  %848 = vmatprep.subr.mxu1 %v3399_v62 }
 0x22e   :  { %778 = vmatpush1.msra.mxu0 %v3400_v56  ;;  %849 = vmatpush1.msra.mxu1 %v3401_v51  ;;  %v3411_v56 = vld [vmem:[#allocation26_spill] sm:$0xff]  ;;  %v3412_v51 = vld [vmem:[#allocation27_spill] sm:$0xff] }
 0x22f   :  { %779 = vmatprep.subr.mxu0 %v3402_v48  ;;  %850 = vmatprep.subr.mxu1 %v3403_v46  ;;  %v3413_v48 = vmov 0.0   ;;  %v3414_v46 = vld [vmem:[#allocation28_spill] sm:$0xff] }
 0x230   :  { %780 = vmatpush1.msra.mxu0 %v3404_v54  ;;  %851 = vmatpush1.msra.mxu1 %v3405_v63  ;;  %v3415_v63 = vld [vmem:[#allocation5_spill] sm:$0xff] }
 0x231   :  { %781 = vmatprep.subr.mxu0 %v3406_v52  ;;  %852 = vmatprep.subr.mxu1 %v3407_v53  ;;  %v3416_v52 = vld [vmem:[#allocation6_spill] sm:$0xff]  ;;  %v40_v53 = vpop.permute.xlu1 %39 }
 0x232   :  { %782 = vmatpush1.msra.mxu0 %v3408_v42  ;;  %853 = vmatpush1.msra.mxu1 %v3409_v58  ;;  %v3417_v42 = vld [vmem:[#allocation29_spill] sm:$0xff]  ;;  %v3418_v58 = vld [vmem:[#allocation30_spill] sm:$0xff] }
 0x233   :  { %783 = vmatprep.subr.mxu0 %v3410_v61  ;;  %854 = vmatprep.subr.mxu1 %v3411_v56  ;;  %v96_v54 = vmul.f32 %v3417_v42, %v40_v53  ;;  %v97_v62 = vmul.f32 %v3418_v58, %v40_v53  ;;  %v3419_v56 = vld [vmem:[#allocation31_spill] sm:$0xff]  ;;  %v98_v58 = vmul.f32 %v2397_v43, %v40_v53 }
 0x234   :  { %784 = vmatpush1.msra.mxu0 %v3412_v51  ;;  %817 = vmatprep.mubr.f32.mxu0 %v3413_v48 }
 0x235   :  { %855 = vmatpush1.msra.mxu1 %v3414_v46  ;;  %888 = vmatprep.mubr.f32.mxu1 %v3413_v48  ;;  %v150_v61 = vadd.f32 %v2385_v59, %v96_v54  ;;  %v151_v55 = vadd.f32 %v3419_v56, %v97_v62  ;;  %v99_v48 = vmul.f32 %v2392_v50, %v40_v53 }
 0x236   :  { %925 = vmatprep.subr.mxu0 %v3415_v63  ;;  %996 = vmatprep.subr.mxu1 %v3416_v52  ;;  %v3420_v52 = vld [vmem:[#allocation32_spill] sm:$0xff]  ;;  %v152_v54 = vadd.f32 %v2401_v49, %v98_v58 }
 0x237   :  { %v153_v60 = vadd.f32 %v3420_v52, %v99_v48 }
 0x2d5   :  { %v647_v51 = vpop.f32.mrf.mxu0  ;;  %v718_v63 = vpop.f32.mrf.mxu1 }
 0x2d6   :  { %v723_v57 = vadd.f32 %v647_v51, %v150_v61  ;;  %v725_v51 = vadd.f32 %v718_v63, %v152_v54  ;;  %v3449_v63 = vld [vmem:[#allocation32_spill] sm:$0xff] }
 0x2d7   :  { %v649_v44 = vpop.f32.mrf.mxu0  ;;  %v720_v42 = vpop.f32.mrf.mxu1 }
 0x2d8   :  { %v1635_v0 = vmul.f32 -1.442695, %v723_v57  ;;  %v724_v46 = vadd.f32 %v649_v44, %v151_v55  ;;  %v726_v1 = vadd.f32 %v720_v42, %v153_v60 }
 0x2da   :  { %1692 = vpow2.f32 %v1635_v0  ;;  %v1636_v45 = vmul.f32 -1.442695, %v724_v46  ;;  %v1637_v62 = vmul.f32 -1.442695, %v726_v1 }
 0x2dc   :  { %1694 = vpow2.f32 %v1636_v45 }
 0x2dd   :  { %1696 = vpow2.f32 %v1637_v62 }
 0x2e7   :  { %v1693_v56 = vpop.eup %1692 }
 0x2e8   :  { %v730_v61 = vadd.f32 1.0, %v1693_v56 }
 0x2e9   :  { %v1695_v57 = vpop.eup %1694 }
 0x2ea   :  { %1698 = vrcp.f32 %v730_v61  ;;  %v736_v44 = vadd.f32 1.0, %v1695_v57  ;;  %v1697_v0 = vpop.eup %1696 }
 0x2eb   :  { %1700 = vtanh.f32 %v725_v51  ;;  %v743_v46 = vadd.f32 1.0, %v1697_v0 }
 0x2ec   :  { %1702 = vrcp.f32 %v736_v44 }
 0x2ed   :  { %1704 = vrcp.f32 %v743_v46 }
 0x2f7   :  { %v1699_v45 = vpop.eup %1698 }
 0x2f8   :  { %v1701_v55 = vpop.eup %1700 }
 0x2f9   :  { %v1703_v48 = vpop.eup %1702  ;;  %v747_v52 = vmul.f32 %v1701_v55, %v1699_v45 }
 0x2fa   :  { %v746_v60 = vmul.f32 %v1703_v48, %v2494_v47  ;;  %v1705_v1 = vpop.eup %1704 }
 0x2fc   :  { %v2572_v53 = vadd.f32 %v747_v52, %v746_v60 }
 0x2fe   :  { %1706 = vtanh.f32 %v2572_v53 }
 0x30b   :  { %v1707_v56 = vpop.eup %1706 }
 0x30c   :  { %v750_v42 = vmul.f32 %v1707_v56, %v1705_v1 }
 0x30e   :  { %752 = vst [vmem:[#allocation2 + $0x10] sm:$0xff] %v750_v42  ;;  %818 = vmatmul.mubr.f32.vlgmr.msra.gmra.mxu0 %v750_v42  ;;  %889 = vmatmul.mubr.f32.vlgmr.msra.gmra.mxu1 %v750_v42 }
 0x30f   :  { %926 = vmatpush1.msra.mxu0 %v1917_v2  ;;  %997 = vmatpush1.msra.mxu1 %v1924_v3  ;;  %v3421_v2 = vld [vmem:[#allocation7_spill] sm:$0xff]  ;;  %v3422_v3 = vld [vmem:[#allocation8_spill] sm:$0xff] }
 0x310   :  { %927 = vmatprep.subr.mxu0 %v1929_v4  ;;  %998 = vmatprep.subr.mxu1 %v1934_v5  ;;  %v3423_v4 = vld [vmem:[#allocation9_spill] sm:$0xff]  ;;  %v3424_v5 = vld [vmem:[#allocation10_spill] sm:$0xff] }
 0x311   :  { %928 = vmatpush1.msra.mxu0 %v1941_v6  ;;  %999 = vmatpush1.msra.mxu1 %v1946_v7  ;;  %v3425_v6 = vld [vmem:[#allocation11_spill] sm:$0xff]  ;;  %v3426_v7 = vld [vmem:[#allocation12_spill] sm:$0xff] }
 0x312   :  { %929 = vmatprep.subr.mxu0 %v1951_v8  ;;  %1000 = vmatprep.subr.mxu1 %v1958_v9  ;;  %v3427_v8 = vld [vmem:[#allocation13_spill] sm:$0xff]  ;;  %v3428_v9 = vld [vmem:[#allocation14_spill] sm:$0xff] }
 0x313   :  { %930 = vmatpush1.msra.mxu0 %v1963_v10  ;;  %1001 = vmatpush1.msra.mxu1 %v1968_v11  ;;  %v3429_v10 = vld [vmem:[#allocation15_spill] sm:$0xff]  ;;  %v3430_v11 = vld [vmem:[#allocation16_spill] sm:$0xff] }
 0x314   :  { %931 = vmatprep.subr.mxu0 %v1975_v12  ;;  %1002 = vmatprep.subr.mxu1 %v1980_v13  ;;  %v3431_v12 = vld [vmem:[#allocation17_spill] sm:$0xff]  ;;  %v3432_v13 = vld [vmem:[#allocation18_spill] sm:$0xff] }
 0x315   :  { %932 = vmatpush1.msra.mxu0 %v1987_v14  ;;  %1003 = vmatpush1.msra.mxu1 %v1992_v15  ;;  %v3433_v14 = vld [vmem:[#allocation19_spill] sm:$0xff]  ;;  %v3434_v15 = vld [vmem:[#allocation20_spill] sm:$0xff] }
 0x316   :  { %933 = vmatprep.subr.mxu0 %v1999_v16  ;;  %1004 = vmatprep.subr.mxu1 %v2004_v17  ;;  %v3435_v16 = vld [vmem:[#allocation21_spill] sm:$0xff]  ;;  %v3436_v17 = vld [vmem:[#allocation22_spill] sm:$0xff] }
 0x317   :  { %934 = vmatpush1.msra.mxu0 %v2011_v18  ;;  %1005 = vmatpush1.msra.mxu1 %v2016_v19  ;;  %v3437_v18 = vld [vmem:[#allocation23_spill] sm:$0xff]  ;;  %v3438_v19 = vld [vmem:[#allocation24_spill] sm:$0xff] }
 0x318   :  { %935 = vmatprep.subr.mxu0 %v2023_v20  ;;  %1006 = vmatprep.subr.mxu1 %v2028_v21  ;;  %v3439_v20 = vld [vmem:[#allocation25_spill] sm:$0xff]  ;;  %v3440_v21 = vld [vmem:[#allocation26_spill] sm:$0xff] }
 0x319   :  { %936 = vmatpush1.msra.mxu0 %v2035_v22  ;;  %1007 = vmatpush1.msra.mxu1 %v2040_v23  ;;  %v3441_v22 = vld [vmem:[#allocation27_spill] sm:$0xff]  ;;  %v3442_v23 = vmov 0.0  }
 0x31a   :  { %937 = vmatprep.subr.mxu0 %v2047_v24  ;;  %1008 = vmatprep.subr.mxu1 %v2052_v25  ;;  %v3443_v24 = vld [vmem:[#allocation28_spill] sm:$0xff]  ;;  %v2642_v25 = vld [vmem:[%s3215_s2 + $0x1e8] sm:$0xff] }
 0x31b   :  { %938 = vmatpush1.msra.mxu0 %v2059_v26  ;;  %1009 = vmatpush1.msra.mxu1 %v2064_v27  ;;  %3444 = vst [vmem:[#allocation5_spill] sm:$0xff] %v2642_v25  ;;  %v2648_v26 = vld [vmem:[%s3215_s2 + $0x1f8] sm:$0xff]  ;;  %v45_v27 = vpop.permute.xlu1 %44 }
 0x31c   :  { %939 = vmatprep.subr.mxu0 %v2071_v28  ;;  %1010 = vmatprep.subr.mxu1 %v2076_v29  ;;  %3445 = vst [vmem:[#allocation6_spill] sm:$0xff] %v2648_v26  ;;  %v3446_v28 = vld [vmem:[#allocation29_spill] sm:$0xff]  ;;  %v103_v47 = vmul.f32 %v2392_v50, %v45_v27  ;;  %v102_v54 = vmul.f32 %v2397_v43, %v45_v27 }
 0x31d   :  { %940 = vmatpush1.msra.mxu0 %v2083_v30  ;;  %1011 = vmatpush1.msra.mxu1 %v2088_v31  ;;  %v100_v29 = vmul.f32 %v3446_v28, %v45_v27  ;;  %v3447_v30 = vld [vmem:[#allocation30_spill] sm:$0xff] }
 0x31e   :  { %941 = vmatprep.subr.mxu0 %v2095_v32  ;;  %1012 = vmatprep.subr.mxu1 %v2100_v33  ;;  %v101_v31 = vmul.f32 %v3447_v30, %v45_v27  ;;  %v157_v52 = vadd.f32 %v3449_v63, %v103_v47  ;;  %v156_v51 = vadd.f32 %v2401_v49, %v102_v54  ;;  %v2774_v27 = vld [vmem:[%s3215_s2 + $0x148] sm:$0xff]  ;;  %v2864_v54 = vld [vmem:[%s3215_s2 + $0xf0] sm:$0xff] }
 0x31f   :  { %942 = vmatpush1.msra.mxu0 %v2107_v34  ;;  %1013 = vmatpush1.msra.mxu1 %v2112_v35  ;;  %v154_v32 = vadd.f32 %v2385_v59, %v100_v29  ;;  %v3448_v35 = vld [vmem:[#allocation31_spill] sm:$0xff]  ;;  %v2780_v29 = vld [vmem:[%s3215_s2 + $0x158] sm:$0xff]  ;;  %v2846_v47 = vld [vmem:[%s3215_s2 + $0xe8] sm:$0xff] }
 0x320   :  { %943 = vmatprep.subr.mxu0 %v2119_v36  ;;  %1014 = vmatprep.subr.mxu1 %v2124_v37  ;;  %v155_v36 = vadd.f32 %v3448_v35, %v101_v31  ;;  %v2786_v31 = vld [vmem:[%s3215_s2 + $0x140] sm:$0xff] }
 0x321   :  { %944 = vmatpush1.msra.mxu0 %v2131_v38  ;;  %1015 = vmatpush1.msra.mxu1 %v2136_v39 }
 0x322   :  { %945 = vmatprep.subr.mxu0 %v2143_v40  ;;  %1016 = vmatprep.subr.mxu1 %v2148_v41 }
 0x323   :  { %946 = vmatpush1.msra.mxu0 %v3421_v2  ;;  %1017 = vmatpush1.msra.mxu1 %v3422_v3 }
 0x324   :  { %947 = vmatprep.subr.mxu0 %v3423_v4  ;;  %1018 = vmatprep.subr.mxu1 %v3424_v5 }
 0x325   :  { %948 = vmatpush1.msra.mxu0 %v3425_v6  ;;  %1019 = vmatpush1.msra.mxu1 %v3426_v7  ;;  %v2666_v7 = vld [vmem:[%s3215_s2 + $0x1e0] sm:$0xff] }
 0x326   :  { %949 = vmatprep.subr.mxu0 %v3427_v8  ;;  %1020 = vmatprep.subr.mxu1 %v3428_v9  ;;  %v2678_v8 = vld [vmem:[%s3215_s2 + $0x1c8] sm:$0xff]  ;;  %v2684_v9 = vld [vmem:[%s3215_s2 + $0x1d8] sm:$0xff] }
 0x327   :  { %950 = vmatpush1.msra.mxu0 %v3429_v10  ;;  %1021 = vmatpush1.msra.mxu1 %v3430_v11  ;;  %v2690_v10 = vld [vmem:[%s3215_s2 + $0x1c0] sm:$0xff]  ;;  %v2696_v11 = vld [vmem:[%s3215_s2 + $0x1d0] sm:$0xff] }
 0x328   :  { %951 = vmatprep.subr.mxu0 %v3431_v12  ;;  %1022 = vmatprep.subr.mxu1 %v3432_v13  ;;  %v2702_v12 = vld [vmem:[%s3215_s2 + $0x1a8] sm:$0xff]  ;;  %v2708_v13 = vld [vmem:[%s3215_s2 + $0x1b8] sm:$0xff] }
 0x329   :  { %952 = vmatpush1.msra.mxu0 %v3433_v14  ;;  %1023 = vmatpush1.msra.mxu1 %v3434_v15  ;;  %v2714_v14 = vld [vmem:[%s3215_s2 + $0x1a0] sm:$0xff]  ;;  %v2720_v15 = vld [vmem:[%s3215_s2 + $0x1b0] sm:$0xff] }
 0x32a   :  { %953 = vmatprep.subr.mxu0 %v3435_v16  ;;  %1024 = vmatprep.subr.mxu1 %v3436_v17  ;;  %v2726_v16 = vld [vmem:[%s3215_s2 + $0x188] sm:$0xff]  ;;  %v2732_v17 = vld [vmem:[%s3215_s2 + $0x198] sm:$0xff] }
 0x32b   :  { %954 = vmatpush1.msra.mxu0 %v3437_v18  ;;  %1025 = vmatpush1.msra.mxu1 %v3438_v19  ;;  %v2738_v18 = vld [vmem:[%s3215_s2 + $0x180] sm:$0xff]  ;;  %v2744_v19 = vld [vmem:[%s3215_s2 + $0x190] sm:$0xff] }
 0x32c   :  { %955 = vmatprep.subr.mxu0 %v3439_v20  ;;  %1026 = vmatprep.subr.mxu1 %v3440_v21  ;;  %v2750_v20 = vld [vmem:[%s3215_s2 + $0x168] sm:$0xff]  ;;  %v2756_v21 = vld [vmem:[%s3215_s2 + $0x178] sm:$0xff] }
 0x32d   :  { %956 = vmatpush1.msra.mxu0 %v3441_v22  ;;  %989 = vmatprep.mubr.f32.mxu0 %v3442_v23  ;;  %v2762_v22 = vld [vmem:[%s3215_s2 + $0x160] sm:$0xff] }
 0x32e   :  { %1027 = vmatpush1.msra.mxu1 %v3443_v24  ;;  %1060 = vmatprep.mubr.f32.mxu1 %v3442_v23  ;;  %v2768_v24 = vld [vmem:[%s3215_s2 + $0x170] sm:$0xff] }
 0x32f   :  { %1097 = vmatprep.subr.mxu0 %v2642_v25  ;;  %1168 = vmatprep.subr.mxu1 %v2648_v26 }
 0x3ce   :  { %v819_v33 = vpop.f32.mrf.mxu0  ;;  %v890_v40 = vpop.f32.mrf.mxu1 }
 0x3cf   :  { %v895_v34 = vadd.f32 %v819_v33, %v154_v32  ;;  %v897_v44 = vadd.f32 %v890_v40, %v156_v51  ;;  %v2792_v32 = vld [vmem:[%s3215_s2 + $0x150] sm:$0xff]  ;;  %v2798_v33 = vld [vmem:[%s3215_s2 + $0x128] sm:$0xff]  ;;  %v2834_v40 = vld [vmem:[%s3215_s2 + $0x100] sm:$0xff] }
 0x3d0   :  { %v821_v37 = vpop.f32.mrf.mxu0  ;;  %v892_v58 = vpop.f32.mrf.mxu1  ;;  %v2876_v51 = vld [vmem:[%s3215_s2 + $0xd8] sm:$0xff] }
 0x3d1   :  { %v1638_v38 = vmul.f32 -1.442695, %v895_v34  ;;  %v896_v39 = vadd.f32 %v821_v37, %v155_v36  ;;  %v898_v62 = vadd.f32 %v892_v58, %v157_v52  ;;  %v2804_v34 = vld [vmem:[%s3215_s2 + $0x138] sm:$0xff]  ;;  %v2810_v36 = vld [vmem:[%s3215_s2 + $0x120] sm:$0xff]  ;;  %v2816_v37 = vld [vmem:[%s3215_s2 + $0x130] sm:$0xff] }
 0x3d2   :  { %v2852_v58 = vld [vmem:[%s3215_s2 + $0xf8] sm:$0xff]  ;;  %v2858_v52 = vld [vmem:[%s3215_s2 + $0xe0] sm:$0xff] }
 0x3d3   :  { %1708 = vpow2.f32 %v1638_v38  ;;  %v1639_v41 = vmul.f32 -1.442695, %v896_v39  ;;  %v1640_v61 = vmul.f32 -1.442695, %v898_v62  ;;  %v2822_v38 = vld [vmem:[%s3215_s2 + $0x108] sm:$0xff]  ;;  %v2828_v39 = vld [vmem:[%s3215_s2 + $0x118] sm:$0xff] }
 0x3d4   :  { %v2870_v62 = vld [vmem:[%s3215_s2 + $0xc8] sm:$0xff] }
 0x3d5   :  { %1710 = vpow2.f32 %v1639_v41  ;;  %v2840_v41 = vld [vmem:[%s3215_s2 + $0x110] sm:$0xff] }
 0x3d6   :  { %1712 = vpow2.f32 %v1640_v61  ;;  %v2882_v61 = vld [vmem:[%s3215_s2 + $0xc0] sm:$0xff] }
 0x3e0   :  { %v1709_v57 = vpop.eup %1708 }
 0x3e1   :  { %v902_v0 = vadd.f32 1.0, %v1709_v57  ;;  %v2888_v57 = vld [vmem:[%s3215_s2 + $0xd0] sm:$0xff] }
 0x3e2   :  { %v1711_v45 = vpop.eup %1710 }
 0x3e3   :  { %1714 = vrcp.f32 %v902_v0  ;;  %v908_v55 = vadd.f32 1.0, %v1711_v45  ;;  %v1713_v48 = vpop.eup %1712  ;;  %v2900_v0 = vld [vmem:[%s3215_s2 + $0xb8] sm:$0xff]  ;;  %v2906_v45 = vld [vmem:[%s3215_s2 + $0xa0] sm:$0xff] }
 0x3e4   :  { %1716 = vtanh.f32 %v897_v44  ;;  %v915_v56 = vadd.f32 1.0, %v1713_v48  ;;  %v2894_v44 = vld [vmem:[%s3215_s2 + $0xa8] sm:$0xff]  ;;  %3450 = vst [vmem:[#allocation7_spill] sm:$0xff] %v2906_v45 }
 0x3e5   :  { %1718 = vrcp.f32 %v908_v55  ;;  %v2912_v55 = vld [vmem:[%s3215_s2 + $0xb0] sm:$0xff]  ;;  %v2918_v48 = vld [vmem:[%s3215_s2 + $0x88] sm:$0xff] }
 0x3e6   :  { %1720 = vrcp.f32 %v915_v56  ;;  %3451 = vst [vmem:[#allocation8_spill] sm:$0xff] %v2912_v55  ;;  %3452 = vst [vmem:[#allocation9_spill] sm:$0xff] %v2918_v48  ;;  %v2942_v56 = vld [vmem:[%s3215_s2 + $0x68] sm:$0xff] }
 0x3e7   :  { %3456 = vst [vmem:[#allocation13_spill] sm:$0xff] %v2942_v56 }
 0x3f0   :  { %v1715_v46 = vpop.eup %1714 }
 0x3f1   :  { %v1717_v60 = vpop.eup %1716 }
 0x3f2   :  { %v1719_v1 = vpop.eup %1718  ;;  %v919_v42 = vmul.f32 %v1717_v60, %v1715_v46  ;;  %v2924_v46 = vld [vmem:[%s3215_s2 + $0x98] sm:$0xff]  ;;  %v2930_v60 = vld [vmem:[%s3215_s2 + $0x80] sm:$0xff] }
 0x3f3   :  { %v918_v2 = vmul.f32 %v1719_v1, %v2572_v53  ;;  %v1721_v4 = vpop.eup %1720  ;;  %v2672_v53 = vld [vmem:[%s3215_s2 + $0x1f0] sm:$0xff]  ;;  %3453 = vst [vmem:[#allocation10_spill] sm:$0xff] %v2924_v46  ;;  %3454 = vst [vmem:[#allocation11_spill] sm:$0xff] %v2930_v60 }
 0x3f4   :  { %v2936_v1 = vld [vmem:[%s3215_s2 + $0x90] sm:$0xff] }
 0x3f5   :  { %v2660_v3 = vadd.f32 %v919_v42, %v918_v2  ;;  %3455 = vst [vmem:[#allocation12_spill] sm:$0xff] %v2936_v1  ;;  %v2948_v42 = vld [vmem:[%s3215_s2 + $0x78] sm:$0xff]  ;;  %v2954_v2 = vld [vmem:[%s3215_s2 + $0x60] sm:$0xff] }
 0x3f6   :  { %3457 = vst [vmem:[#allocation14_spill] sm:$0xff] %v2948_v42  ;;  %3458 = vst [vmem:[#allocation15_spill] sm:$0xff] %v2954_v2 }
 0x3f7   :  { %1722 = vtanh.f32 %v2660_v3 }
 0x404   :  { %v1723_v5 = vpop.eup %1722 }
 0x405   :  { %v922_v6 = vmul.f32 %v1723_v5, %v1721_v4  ;;  %v2960_v4 = vld [vmem:[%s3215_s2 + $0x70] sm:$0xff]  ;;  %v2966_v5 = vld [vmem:[%s3215_s2 + $0x48] sm:$0xff] }
 0x406   :  { %3459 = vst [vmem:[#allocation16_spill] sm:$0xff] %v2960_v4  ;;  %3460 = vst [vmem:[#allocation17_spill] sm:$0xff] %v2966_v5 }
 0x407   :  { %924 = vst [vmem:[#allocation2 + $0x18] sm:$0xff] %v922_v6  ;;  %990 = vmatmul.mubr.f32.vlgmr.msra.gmra.mxu0 %v922_v6  ;;  %1061 = vmatmul.mubr.f32.vlgmr.msra.gmra.mxu1 %v922_v6  ;;  %v2972_v6 = vld [vmem:[%s3215_s2 + $0x58] sm:$0xff] }
 0x408   :  { %1098 = vmatpush1.msra.mxu0 %v2666_v7  ;;  %1169 = vmatpush1.msra.mxu1 %v2672_v53  ;;  %3461 = vst [vmem:[#allocation18_spill] sm:$0xff] %v2972_v6 }
 0x409   :  { %1099 = vmatprep.subr.mxu0 %v2678_v8  ;;  %1170 = vmatprep.subr.mxu1 %v2684_v9 }
 0x40a   :  { %1100 = vmatpush1.msra.mxu0 %v2690_v10  ;;  %1171 = vmatpush1.msra.mxu1 %v2696_v11 }
 0x40b   :  { %1101 = vmatprep.subr.mxu0 %v2702_v12  ;;  %1172 = vmatprep.subr.mxu1 %v2708_v13 }
 0x40c   :  { %1102 = vmatpush1.msra.mxu0 %v2714_v14  ;;  %1173 = vmatpush1.msra.mxu1 %v2720_v15 }
 0x40d   :  { %1103 = vmatprep.subr.mxu0 %v2726_v16  ;;  %1174 = vmatprep.subr.mxu1 %v2732_v17 }
 0x40e   :  { %1104 = vmatpush1.msra.mxu0 %v2738_v18  ;;  %1175 = vmatpush1.msra.mxu1 %v2744_v19 }
 0x40f   :  { %1105 = vmatprep.subr.mxu0 %v2750_v20  ;;  %1176 = vmatprep.subr.mxu1 %v2756_v21 }
 0x410   :  { %1106 = vmatpush1.msra.mxu0 %v2762_v22  ;;  %1177 = vmatpush1.msra.mxu1 %v2768_v24 }
 0x411   :  { %1107 = vmatprep.subr.mxu0 %v2774_v27  ;;  %1178 = vmatprep.subr.mxu1 %v2780_v29 }
 0x412   :  { %1108 = vmatpush1.msra.mxu0 %v2786_v31  ;;  %1179 = vmatpush1.msra.mxu1 %v2792_v32 }
 0x413   :  { %1109 = vmatprep.subr.mxu0 %v2798_v33  ;;  %1180 = vmatprep.subr.mxu1 %v2804_v34 }
 0x414   :  { %1110 = vmatpush1.msra.mxu0 %v2810_v36  ;;  %1181 = vmatpush1.msra.mxu1 %v2816_v37 }
 0x415   :  { %1111 = vmatprep.subr.mxu0 %v2822_v38  ;;  %1182 = vmatprep.subr.mxu1 %v2828_v39 }
 0x416   :  { %1112 = vmatpush1.msra.mxu0 %v2834_v40  ;;  %1183 = vmatpush1.msra.mxu1 %v2840_v41 }
 0x417   :  { %1113 = vmatprep.subr.mxu0 %v2846_v47  ;;  %1184 = vmatprep.subr.mxu1 %v2852_v58 }
 0x418   :  { %1114 = vmatpush1.msra.mxu0 %v2858_v52  ;;  %1185 = vmatpush1.msra.mxu1 %v2864_v54 }
 0x419   :  { %1115 = vmatprep.subr.mxu0 %v2870_v62  ;;  %1186 = vmatprep.subr.mxu1 %v2876_v51 }
 0x41a   :  { %1116 = vmatpush1.msra.mxu0 %v2882_v61  ;;  %1187 = vmatpush1.msra.mxu1 %v2888_v57 }
 0x41b   :  { %1117 = vmatprep.subr.mxu0 %v2894_v44  ;;  %1188 = vmatprep.subr.mxu1 %v2900_v0 }
 0x41c   :  { %1118 = vmatpush1.msra.mxu0 %v2906_v45  ;;  %1189 = vmatpush1.msra.mxu1 %v2912_v55 }
 0x41d   :  { %1119 = vmatprep.subr.mxu0 %v2918_v48  ;;  %1190 = vmatprep.subr.mxu1 %v2924_v46 }
 0x41e   :  { %1120 = vmatpush1.msra.mxu0 %v2930_v60  ;;  %1191 = vmatpush1.msra.mxu1 %v2936_v1 }
 0x41f   :  { %1121 = vmatprep.subr.mxu0 %v2942_v56  ;;  %1192 = vmatprep.subr.mxu1 %v2948_v42 }
 0x420   :  { %1122 = vmatpush1.msra.mxu0 %v2954_v2  ;;  %1193 = vmatpush1.msra.mxu1 %v2960_v4  ;;  %v2978_v2 = vld [vmem:[%s3215_s2 + $0x40] sm:$0xff]  ;;  %v2984_v4 = vld [vmem:[%s3215_s2 + $0x50] sm:$0xff] }
 0x421   :  { %1123 = vmatprep.subr.mxu0 %v2966_v5  ;;  %1194 = vmatprep.subr.mxu1 %v2972_v6  ;;  %3462 = vst [vmem:[#allocation19_spill] sm:$0xff] %v2978_v2  ;;  %3463 = vst [vmem:[#allocation20_spill] sm:$0xff] %v2984_v4  ;;  %v2990_v5 = vld [vmem:[%s3215_s2 + $0x28] sm:$0xff]  ;;  %v2996_v6 = vld [vmem:[%s3215_s2 + $0x38] sm:$0xff] }
 0x422   :  { %1124 = vmatpush1.msra.mxu0 %v2978_v2  ;;  %1195 = vmatpush1.msra.mxu1 %v2984_v4  ;;  %3464 = vst [vmem:[#allocation21_spill] sm:$0xff] %v2990_v5  ;;  %3465 = vst [vmem:[#allocation22_spill] sm:$0xff] %v2996_v6  ;;  %v3002_v2 = vld [vmem:[%s3215_s2 + $0x20] sm:$0xff]  ;;  %v3008_v4 = vld [vmem:[%s3215_s2 + $0x30] sm:$0xff] }
 0x423   :  { %1125 = vmatprep.subr.mxu0 %v2990_v5  ;;  %1196 = vmatprep.subr.mxu1 %v2996_v6  ;;  %3466 = vst [vmem:[#allocation23_spill] sm:$0xff] %v3002_v2  ;;  %3467 = vst [vmem:[#allocation24_spill] sm:$0xff] %v3008_v4  ;;  %v3014_v5 = vld [vmem:[%s3215_s2 + $0x8] sm:$0xff]  ;;  %v3020_v6 = vld [vmem:[%s3215_s2 + $0x18] sm:$0xff] }
 0x424   :  { %1126 = vmatpush1.msra.mxu0 %v3002_v2  ;;  %1197 = vmatpush1.msra.mxu1 %v3008_v4  ;;  %3468 = vst [vmem:[#allocation25_spill] sm:$0xff] %v3014_v5  ;;  %3469 = vst [vmem:[#allocation26_spill] sm:$0xff] %v3020_v6  ;;  %v3026_v2 = vld [vmem:[%s3215_s2] sm:$0xff] }
 0x425   :  { %1127 = vmatprep.subr.mxu0 %v3014_v5  ;;  %1198 = vmatprep.subr.mxu1 %v3020_v6  ;;  %3470 = vst [vmem:[#allocation27_spill] sm:$0xff] %v3026_v2  ;;  %v3033_v5 = vld [vmem:[%s3215_s2 + $0x10] sm:$0xff]  ;;  %v50_v6 = vpop.permute.xlu0 %49  ;;  %s1876_s2 = smov [#allocation2]  }
 0x426   :  { %1128 = vmatpush1.msra.mxu0 %v3026_v2  ;;  %1161 = vmatprep.mubr.f32.mxu0 %v3442_v23  ;;  %3471 = vst [vmem:[#allocation28_spill] sm:$0xff] %v3033_v5  ;;  %v104_v4 = vmul.f32 %v3446_v28, %v50_v6  ;;  %v105_v2 = vmul.f32 %v3447_v30, %v50_v6  ;;  %s1618_s16 = sshll.u32 %s1876_s2, 4  ;;  %s1619_s16 = int_to_ptr.vmem [resolvable:$true] %s1618_s16 }
 0x427   :  { %1199 = vmatpush1.msra.mxu1 %v3033_v5  ;;  %1232 = vmatprep.mubr.f32.mxu1 %v3442_v23  ;;  %v106_v30 = vmul.f32 %v2397_v43, %v50_v6  ;;  %s1852_s17 = scalar_lea.vmem %s1619_s16, 1024  ;;  %p1857_p1 = scmp.lt.s32.totalorder %s1619_s16, %s1619_s16 }
 0x428   :  { %1269 = vmatprep.subr.mxu0 %v2642_v25  ;;  %1340 = vmatprep.subr.mxu1 %v2648_v26  ;;  %v158_v42 = vadd.f32 %v2385_v59, %v104_v4  ;;  %v159_v60 = vadd.f32 %v3448_v35, %v105_v2  ;;  %v107_v25 = vmul.f32 %v2392_v50, %v50_v6  ;;  %v3475_v6 = vld [vmem:[#allocation10_spill] sm:$0xff]  ;;  %p1853_p0 = scmp.ne.s32.totalorder %s1619_s16, %s1852_s17  ;;  %p1858_p2 = scmp.lt.s32.totalorder %s1852_s17, %s1852_s17 }
 0x429   :  { %v160_v4 = vadd.f32 %v2401_v49, %v106_v30 }
 0x42a   :  { %v161_v28 = vadd.f32 %v3449_v63, %v107_v25  ;;  %p1859_p3 = por %p1858_p2, %p1857_p1 }
 0x42c   :  { %p1860_p4 = pnand %p1859_p3, %p1853_p0 }
 0x4c7   :  { %v991_v56 = vpop.f32.mrf.mxu0  ;;  %v1062_v23 = vpop.f32.mrf.mxu1 }
 0x4c8   :  { %v1067_v1 = vadd.f32 %v991_v56, %v158_v42  ;;  %v1069_v2 = vadd.f32 %v1062_v23, %v160_v4  ;;  %v3476_v4 = vld [vmem:[#allocation11_spill] sm:$0xff] }
 0x4c9   :  { %v993_v46 = vpop.f32.mrf.mxu0  ;;  %v1064_v26 = vpop.f32.mrf.mxu1 }
 0x4ca   :  { %v1641_v48 = vmul.f32 -1.442695, %v1067_v1  ;;  %v1068_v5 = vadd.f32 %v993_v46, %v159_v60  ;;  %v1070_v45 = vadd.f32 %v1064_v26, %v161_v28 }
 0x4cc   :  { %1724 = vpow2.f32 %v1641_v48  ;;  %v1642_v55 = vmul.f32 -1.442695, %v1068_v5  ;;  %v1643_v56 = vmul.f32 -1.442695, %v1070_v45 }
 0x4ce   :  { %1726 = vpow2.f32 %v1642_v55 }
 0x4cf   :  { %1728 = vpow2.f32 %v1643_v56  ;;  %v3477_v56 = vld [vmem:[#allocation12_spill] sm:$0xff] }
 0x4d9   :  { %v1725_v42 = vpop.eup %1724 }
 0x4da   :  { %v1074_v35 = vadd.f32 1.0, %v1725_v42  ;;  %v3478_v42 = vld [vmem:[#allocation13_spill] sm:$0xff] }
 0x4db   :  { %v1727_v1 = vpop.eup %1726 }
 0x4dc   :  { %1730 = vrcp.f32 %v1074_v35  ;;  %v1080_v48 = vadd.f32 1.0, %v1727_v1  ;;  %v1729_v46 = vpop.eup %1728  ;;  %v3472_v35 = vld [vmem:[#allocation7_spill] sm:$0xff] }
 0x4dd   :  { %1732 = vtanh.f32 %v1069_v2  ;;  %v1087_v25 = vadd.f32 1.0, %v1729_v46  ;;  %v3479_v2 = vld [vmem:[#allocation14_spill] sm:$0xff]  ;;  %v3480_v1 = vld [vmem:[#allocation15_spill] sm:$0xff]  ;;  %v3482_v46 = vld [vmem:[#allocation17_spill] sm:$0xff] }
 0x4de   :  { %1734 = vrcp.f32 %v1080_v48  ;;  %v3481_v48 = vld [vmem:[#allocation16_spill] sm:$0xff] }
 0x4df   :  { %1736 = vrcp.f32 %v1087_v25  ;;  %v3486_v25 = vld [vmem:[#allocation21_spill] sm:$0xff] }
 0x4e9   :  { %v1731_v55 = vpop.eup %1730 }
 0x4ea   :  { %v1733_v60 = vpop.eup %1732 }
 0x4eb   :  { %v1735_v5 = vpop.eup %1734  ;;  %v1091_v63 = vmul.f32 %v1733_v60, %v1731_v55  ;;  %v3483_v55 = vld [vmem:[#allocation18_spill] sm:$0xff]  ;;  %v3484_v60 = vld [vmem:[#allocation19_spill] sm:$0xff] }
 0x4ec   :  { %v1090_v26 = vmul.f32 %v1735_v5, %v2660_v3  ;;  %v1737_v23 = vpop.eup %1736  ;;  %v3474_v3 = vld [vmem:[#allocation9_spill] sm:$0xff]  ;;  %v3485_v5 = vld [vmem:[#allocation20_spill] sm:$0xff] }
 0x4ee   :  { %v3048_v28 = vadd.f32 %v1091_v63, %v1090_v26  ;;  %v3473_v63 = vld [vmem:[#allocation8_spill] sm:$0xff]  ;;  %v3487_v26 = vld [vmem:[#allocation22_spill] sm:$0xff] }
 0x4f0   :  { %1738 = vtanh.f32 %v3048_v28 }
 0x4fd   :  { %v1739_v30 = vpop.eup %1738 }
 0x4fe   :  { %v1094_v45 = vmul.f32 %v1739_v30, %v1737_v23  ;;  %v3488_v23 = vld [vmem:[#allocation23_spill] sm:$0xff]  ;;  %v3489_v30 = vld [vmem:[#allocation24_spill] sm:$0xff] }
 0x500   :  { %1096 = vst [vmem:[#allocation2 + $0x20] sm:$0xff] %v1094_v45  ;;  %1162 = vmatmul.mubr.f32.vlgmr.msra.gmra.mxu0 %v1094_v45  ;;  %1233 = vmatmul.mubr.f32.vlgmr.msra.gmra.mxu1 %v1094_v45  ;;  %v3490_v45 = vld [vmem:[#allocation25_spill] sm:$0xff] }
 0x501   :  { %1270 = vmatpush1.msra.mxu0 %v2666_v7  ;;  %1341 = vmatpush1.msra.mxu1 %v2672_v53 }
 0x502   :  { %1271 = vmatprep.subr.mxu0 %v2678_v8  ;;  %1342 = vmatprep.subr.mxu1 %v2684_v9 }
 0x503   :  { %1272 = vmatpush1.msra.mxu0 %v2690_v10  ;;  %1343 = vmatpush1.msra.mxu1 %v2696_v11 }
 0x504   :  { %1273 = vmatprep.subr.mxu0 %v2702_v12  ;;  %1344 = vmatprep.subr.mxu1 %v2708_v13 }
 0x505   :  { %1274 = vmatpush1.msra.mxu0 %v2714_v14  ;;  %1345 = vmatpush1.msra.mxu1 %v2720_v15 }
 0x506   :  { %1275 = vmatprep.subr.mxu0 %v2726_v16  ;;  %1346 = vmatprep.subr.mxu1 %v2732_v17 }
 0x507   :  { %1276 = vmatpush1.msra.mxu0 %v2738_v18  ;;  %1347 = vmatpush1.msra.mxu1 %v2744_v19 }
 0x508   :  { %1277 = vmatprep.subr.mxu0 %v2750_v20  ;;  %1348 = vmatprep.subr.mxu1 %v2756_v21 }
 0x509   :  { %1278 = vmatpush1.msra.mxu0 %v2762_v22  ;;  %1349 = vmatpush1.msra.mxu1 %v2768_v24 }
 0x50a   :  { %1279 = vmatprep.subr.mxu0 %v2774_v27  ;;  %1350 = vmatprep.subr.mxu1 %v2780_v29 }
 0x50b   :  { %1280 = vmatpush1.msra.mxu0 %v2786_v31  ;;  %1351 = vmatpush1.msra.mxu1 %v2792_v32 }
 0x50c   :  { %1281 = vmatprep.subr.mxu0 %v2798_v33  ;;  %1352 = vmatprep.subr.mxu1 %v2804_v34 }
 0x50d   :  { %1282 = vmatpush1.msra.mxu0 %v2810_v36  ;;  %1353 = vmatpush1.msra.mxu1 %v2816_v37 }
 0x50e   :  { %1283 = vmatprep.subr.mxu0 %v2822_v38  ;;  %1354 = vmatprep.subr.mxu1 %v2828_v39 }
 0x50f   :  { %1284 = vmatpush1.msra.mxu0 %v2834_v40  ;;  %1355 = vmatpush1.msra.mxu1 %v2840_v41 }
 0x510   :  { %1285 = vmatprep.subr.mxu0 %v2846_v47  ;;  %1356 = vmatprep.subr.mxu1 %v2852_v58 }
 0x511   :  { %1286 = vmatpush1.msra.mxu0 %v2858_v52  ;;  %1357 = vmatpush1.msra.mxu1 %v2864_v54 }
 0x512   :  { %1287 = vmatprep.subr.mxu0 %v2870_v62  ;;  %1358 = vmatprep.subr.mxu1 %v2876_v51 }
 0x513   :  { %1288 = vmatpush1.msra.mxu0 %v2882_v61  ;;  %1359 = vmatpush1.msra.mxu1 %v2888_v57 }
 0x514   :  { %1289 = vmatprep.subr.mxu0 %v2894_v44  ;;  %1360 = vmatprep.subr.mxu1 %v2900_v0 }
 0x515   :  { %1290 = vmatpush1.msra.mxu0 %v3472_v35  ;;  %1361 = vmatpush1.msra.mxu1 %v3473_v63  ;;  %v3500_v63 = vld [vmem:[#allocation32_spill] sm:$0xff] }
 0x516   :  { %1291 = vmatprep.subr.mxu0 %v3474_v3  ;;  %1362 = vmatprep.subr.mxu1 %v3475_v6 }
 0x517   :  { %1292 = vmatpush1.msra.mxu0 %v3476_v4  ;;  %1363 = vmatpush1.msra.mxu1 %v3477_v56 }
 0x518   :  { %1293 = vmatprep.subr.mxu0 %v3478_v42  ;;  %1364 = vmatprep.subr.mxu1 %v3479_v2 }
 0x519   :  { %1294 = vmatpush1.msra.mxu0 %v3480_v1  ;;  %1365 = vmatpush1.msra.mxu1 %v3481_v48  ;;  %v3491_v1 = vld [vmem:[#allocation26_spill] sm:$0xff]  ;;  %v3492_v48 = vld [vmem:[#allocation27_spill] sm:$0xff] }
 0x51a   :  { %1295 = vmatprep.subr.mxu0 %v3482_v46  ;;  %1366 = vmatprep.subr.mxu1 %v3483_v55  ;;  %v3493_v46 = vmov 0.0   ;;  %v3494_v55 = vld [vmem:[#allocation28_spill] sm:$0xff] }
 0x51b   :  { %1296 = vmatpush1.msra.mxu0 %v3484_v60  ;;  %1367 = vmatpush1.msra.mxu1 %v3485_v5  ;;  %v3495_v5 = vld [vmem:[#allocation5_spill] sm:$0xff] }
 0x51c   :  { %1297 = vmatprep.subr.mxu0 %v3486_v25  ;;  %1368 = vmatprep.subr.mxu1 %v3487_v26  ;;  %v3496_v25 = vld [vmem:[#allocation6_spill] sm:$0xff]  ;;  %v55_v26 = vpop.permute.xlu1 %54 }
 0x51d   :  { %1298 = vmatpush1.msra.mxu0 %v3488_v23  ;;  %1369 = vmatpush1.msra.mxu1 %v3489_v30  ;;  %v3497_v23 = vld [vmem:[#allocation29_spill] sm:$0xff]  ;;  %v3498_v30 = vld [vmem:[#allocation30_spill] sm:$0xff] }
 0x51e   :  { %1299 = vmatprep.subr.mxu0 %v3490_v45  ;;  %1370 = vmatprep.subr.mxu1 %v3491_v1  ;;  %v108_v60 = vmul.f32 %v3497_v23, %v55_v26  ;;  %v109_v2 = vmul.f32 %v3498_v30, %v55_v26  ;;  %v110_v30 = vmul.f32 %v2397_v43, %v55_v26 }
 0x51f   :  { %1300 = vmatpush1.msra.mxu0 %v3492_v48  ;;  %1333 = vmatprep.mubr.f32.mxu0 %v3493_v46  ;;  %v3499_v48 = vld [vmem:[#allocation31_spill] sm:$0xff] }
 0x520   :  { %1371 = vmatpush1.msra.mxu1 %v3494_v55  ;;  %1404 = vmatprep.mubr.f32.mxu1 %v3493_v46  ;;  %v162_v45 = vadd.f32 %v2385_v59, %v108_v60  ;;  %v163_v56 = vadd.f32 %v3499_v48, %v109_v2  ;;  %v164_v60 = vadd.f32 %v2401_v49, %v110_v30 }
 0x521   :  { %1441 = vmatprep.subr.mxu0 %v3495_v5  ;;  %1512 = vmatprep.subr.mxu1 %v3496_v25  ;;  %v111_v5 = vmul.f32 %v2392_v50, %v55_v26 }
 0x523   :  { %v165_v23 = vadd.f32 %v3500_v63, %v111_v5 }
 0x5c0   :  { %v1163_v1 = vpop.f32.mrf.mxu0  ;;  %v1234_v46 = vpop.f32.mrf.mxu1 }
 0x5c1   :  { %v1239_v42 = vadd.f32 %v1163_v1, %v162_v45  ;;  %v1241_v2 = vadd.f32 %v1234_v46, %v164_v60 }
 0x5c2   :  { %v1165_v4 = vpop.f32.mrf.mxu0  ;;  %v1236_v25 = vpop.f32.mrf.mxu1 }
 0x5c3   :  { %v1644_v6 = vmul.f32 -1.442695, %v1239_v42  ;;  %v1240_v55 = vadd.f32 %v1165_v4, %v163_v56  ;;  %v1242_v35 = vadd.f32 %v1236_v25, %v165_v23 }
 0x5c5   :  { %1740 = vpow2.f32 %v1644_v6  ;;  %v1645_v3 = vmul.f32 -1.442695, %v1240_v55  ;;  %v1646_v1 = vmul.f32 -1.442695, %v1242_v35 }
 0x5c7   :  { %1742 = vpow2.f32 %v1645_v3 }
 0x5c8   :  { %1744 = vpow2.f32 %v1646_v1 }
 0x5d2   :  { %v1741_v45 = vpop.eup %1740 }
 0x5d3   :  { %v1246_v48 = vadd.f32 1.0, %v1741_v45 }
 0x5d4   :  { %v1743_v42 = vpop.eup %1742 }
 0x5d5   :  { %1746 = vrcp.f32 %v1246_v48  ;;  %v1252_v6 = vadd.f32 1.0, %v1743_v42  ;;  %v1745_v4 = vpop.eup %1744 }
 0x5d6   :  { %1748 = vtanh.f32 %v1241_v2  ;;  %v1259_v5 = vadd.f32 1.0, %v1745_v4 }
 0x5d7   :  { %1750 = vrcp.f32 %v1252_v6 }
 0x5d8   :  { %1752 = vrcp.f32 %v1259_v5 }
 0x5e2   :  { %v1747_v3 = vpop.eup %1746 }
 0x5e3   :  { %v1749_v56 = vpop.eup %1748 }
 0x5e4   :  { %v1751_v55 = vpop.eup %1750  ;;  %v1263_v63 = vmul.f32 %v1749_v56, %v1747_v3 }
 0x5e5   :  { %v1262_v26 = vmul.f32 %v1751_v55, %v3048_v28  ;;  %v1753_v35 = vpop.eup %1752  ;;  %v3527_v28 = vld [vmem:[#allocation32_spill] sm:$0xff] }
 0x5e7   :  { %v3126_v23 = vadd.f32 %v1263_v63, %v1262_v26 }
 0x5e9   :  { %1754 = vtanh.f32 %v3126_v23 }
 0x5f6   :  { %v1755_v46 = vpop.eup %1754 }
 0x5f7   :  { %v1266_v30 = vmul.f32 %v1755_v46, %v1753_v35 }
 0x5f9   :  { %1268 = vst [vmem:[#allocation2 + $0x28] sm:$0xff] %v1266_v30  ;;  %1334 = vmatmul.mubr.f32.vlgmr.msra.gmra.mxu0 %v1266_v30  ;;  %1405 = vmatmul.mubr.f32.vlgmr.msra.gmra.mxu1 %v1266_v30 }
 0x5fa   :  { %1442 = vmatpush1.msra.mxu0 %v2666_v7  ;;  %1513 = vmatpush1.msra.mxu1 %v2672_v53  ;;  %v3501_v7 = vld [vmem:[#allocation7_spill] sm:$0xff]  ;;  %v3502_v53 = vld [vmem:[#allocation8_spill] sm:$0xff] }
 0x5fb   :  { %1443 = vmatprep.subr.mxu0 %v2678_v8  ;;  %1514 = vmatprep.subr.mxu1 %v2684_v9  ;;  %v3503_v8 = vld [vmem:[#allocation9_spill] sm:$0xff]  ;;  %v3504_v9 = vld [vmem:[#allocation10_spill] sm:$0xff] }
 0x5fc   :  { %1444 = vmatpush1.msra.mxu0 %v2690_v10  ;;  %1515 = vmatpush1.msra.mxu1 %v2696_v11  ;;  %v3505_v10 = vld [vmem:[#allocation11_spill] sm:$0xff]  ;;  %v3506_v11 = vld [vmem:[#allocation12_spill] sm:$0xff] }
 0x5fd   :  { %1445 = vmatprep.subr.mxu0 %v2702_v12  ;;  %1516 = vmatprep.subr.mxu1 %v2708_v13  ;;  %v3507_v12 = vld [vmem:[#allocation13_spill] sm:$0xff]  ;;  %v3508_v13 = vld [vmem:[#allocation14_spill] sm:$0xff] }
 0x5fe   :  { %1446 = vmatpush1.msra.mxu0 %v2714_v14  ;;  %1517 = vmatpush1.msra.mxu1 %v2720_v15  ;;  %v3509_v14 = vld [vmem:[#allocation15_spill] sm:$0xff]  ;;  %v3510_v15 = vld [vmem:[#allocation16_spill] sm:$0xff] }
 0x5ff   :  { %1447 = vmatprep.subr.mxu0 %v2726_v16  ;;  %1518 = vmatprep.subr.mxu1 %v2732_v17  ;;  %v3511_v16 = vld [vmem:[#allocation17_spill] sm:$0xff]  ;;  %v3512_v17 = vld [vmem:[#allocation18_spill] sm:$0xff] }
 0x600   :  { %1448 = vmatpush1.msra.mxu0 %v2738_v18  ;;  %1519 = vmatpush1.msra.mxu1 %v2744_v19  ;;  %v3513_v18 = vld [vmem:[#allocation19_spill] sm:$0xff]  ;;  %v3514_v19 = vld [vmem:[#allocation20_spill] sm:$0xff] }
 0x601   :  { %1449 = vmatprep.subr.mxu0 %v2750_v20  ;;  %1520 = vmatprep.subr.mxu1 %v2756_v21  ;;  %v3515_v20 = vld [vmem:[#allocation21_spill] sm:$0xff]  ;;  %v3516_v21 = vld [vmem:[#allocation22_spill] sm:$0xff] }
 0x602   :  { %1450 = vmatpush1.msra.mxu0 %v2762_v22  ;;  %1521 = vmatpush1.msra.mxu1 %v2768_v24  ;;  %v3517_v22 = vld [vmem:[#allocation23_spill] sm:$0xff]  ;;  %v3518_v24 = vld [vmem:[#allocation24_spill] sm:$0xff] }
 0x603   :  { %1451 = vmatprep.subr.mxu0 %v2774_v27  ;;  %1522 = vmatprep.subr.mxu1 %v2780_v29  ;;  %v3519_v27 = vld [vmem:[#allocation25_spill] sm:$0xff]  ;;  %v3520_v29 = vld [vmem:[#allocation26_spill] sm:$0xff] }
 0x604   :  { %1452 = vmatpush1.msra.mxu0 %v2786_v31  ;;  %1523 = vmatpush1.msra.mxu1 %v2792_v32  ;;  %v3521_v31 = vld [vmem:[#allocation27_spill] sm:$0xff]  ;;  %v3522_v32 = vmov 0.0  }
 0x605   :  { %1453 = vmatprep.subr.mxu0 %v2798_v33  ;;  %1524 = vmatprep.subr.mxu1 %v2804_v34  ;;  %v3523_v33 = vld [vmem:[#allocation28_spill] sm:$0xff]  ;;  %v60_v34 = vpop.permute.xlu0 %59 }
 0x606   :  { %1454 = vmatpush1.msra.mxu0 %v2810_v36  ;;  %1525 = vmatpush1.msra.mxu1 %v2816_v37  ;;  %v3524_v36 = vld [vmem:[#allocation29_spill] sm:$0xff]  ;;  %v114_v48 = vmul.f32 %v2397_v43, %v60_v34 }
 0x607   :  { %1455 = vmatprep.subr.mxu0 %v2822_v38  ;;  %1526 = vmatprep.subr.mxu1 %v2828_v39  ;;  %v112_v37 = vmul.f32 %v3524_v36, %v60_v34  ;;  %v3525_v38 = vld [vmem:[#allocation30_spill] sm:$0xff] }
 0x608   :  { %1456 = vmatpush1.msra.mxu0 %v2834_v40  ;;  %1527 = vmatpush1.msra.mxu1 %v2840_v41  ;;  %v113_v39 = vmul.f32 %v3525_v38, %v60_v34  ;;  %v168_v60 = vadd.f32 %v2401_v49, %v114_v48 }
 0x609   :  { %1457 = vmatprep.subr.mxu0 %v2846_v47  ;;  %1528 = vmatprep.subr.mxu1 %v2852_v58  ;;  %v166_v40 = vadd.f32 %v2385_v59, %v112_v37  ;;  %v3526_v58 = vld [vmem:[#allocation31_spill] sm:$0xff] }
 0x60a   :  { %1458 = vmatpush1.msra.mxu0 %v2858_v52  ;;  %1529 = vmatpush1.msra.mxu1 %v2864_v54  ;;  %v167_v52 = vadd.f32 %v3526_v58, %v113_v39 }
 0x60b   :  { %1459 = vmatprep.subr.mxu0 %v2870_v62  ;;  %1530 = vmatprep.subr.mxu1 %v2876_v51 }
 0x60c   :  { %1460 = vmatpush1.msra.mxu0 %v2882_v61  ;;  %1531 = vmatpush1.msra.mxu1 %v2888_v57 }
 0x60d   :  { %1461 = vmatprep.subr.mxu0 %v2894_v44  ;;  %1532 = vmatprep.subr.mxu1 %v2900_v0  ;;  %v115_v44 = vmul.f32 %v2392_v50, %v60_v34 }
 0x60e   :  { %1462 = vmatpush1.msra.mxu0 %v3501_v7  ;;  %1533 = vmatpush1.msra.mxu1 %v3502_v53 }
 0x60f   :  { %1463 = vmatprep.subr.mxu0 %v3503_v8  ;;  %1534 = vmatprep.subr.mxu1 %v3504_v9  ;;  %v169_v63 = vadd.f32 %v3527_v28, %v115_v44  ;;  %v65_v9 = vpop.permute.xlu1 %64 }
 0x610   :  { %1464 = vmatpush1.msra.mxu0 %v3505_v10  ;;  %1535 = vmatpush1.msra.mxu1 %v3506_v11  ;;  %v116_v10 = vmul.f32 %v3524_v36, %v65_v9  ;;  %v117_v11 = vmul.f32 %v3525_v38, %v65_v9 }
 0x611   :  { %1465 = vmatprep.subr.mxu0 %v3507_v12  ;;  %1536 = vmatprep.subr.mxu1 %v3508_v13 }
 0x612   :  { %1466 = vmatpush1.msra.mxu0 %v3509_v14  ;;  %1537 = vmatpush1.msra.mxu1 %v3510_v15  ;;  %v170_v12 = vadd.f32 %v2385_v59, %v116_v10 }
 0x613   :  { %1467 = vmatprep.subr.mxu0 %v3511_v16  ;;  %1538 = vmatprep.subr.mxu1 %v3512_v17 }
 0x614   :  { %1468 = vmatpush1.msra.mxu0 %v3513_v18  ;;  %1539 = vmatpush1.msra.mxu1 %v3514_v19 }
 0x615   :  { %1469 = vmatprep.subr.mxu0 %v3515_v20  ;;  %1540 = vmatprep.subr.mxu1 %v3516_v21  ;;  %v119_v20 = vmul.f32 %v2392_v50, %v65_v9 }
 0x616   :  { %1470 = vmatpush1.msra.mxu0 %v3517_v22  ;;  %1541 = vmatpush1.msra.mxu1 %v3518_v24  ;;  %v118_v24 = vmul.f32 %v2397_v43, %v65_v9 }
 0x617   :  { %1471 = vmatprep.subr.mxu0 %v3519_v27  ;;  %1542 = vmatprep.subr.mxu1 %v3520_v29  ;;  %v173_v22 = vadd.f32 %v3527_v28, %v119_v20 }
 0x618   :  { %1472 = vmatpush1.msra.mxu0 %v3521_v31  ;;  %1505 = vmatprep.mubr.f32.mxu0 %v3522_v32  ;;  %v172_v59 = vadd.f32 %v2401_v49, %v118_v24 }
 0x619   :  { %1543 = vmatpush1.msra.mxu1 %v3523_v33  ;;  %1576 = vmatprep.mubr.f32.mxu1 %v3522_v32 }
 0x6b9   :  { %v1335_v41 = vpop.f32.mrf.mxu0  ;;  %v1406_v61 = vpop.f32.mrf.mxu1 }
 0x6ba   :  { %v1411_v47 = vadd.f32 %v1335_v41, %v166_v40  ;;  %v1413_v2 = vadd.f32 %v1406_v61, %v168_v60 }
 0x6bb   :  { %v1337_v54 = vpop.f32.mrf.mxu0  ;;  %v1408_v0 = vpop.f32.mrf.mxu1 }
 0x6bc   :  { %v1647_v62 = vmul.f32 -1.442695, %v1411_v47  ;;  %v1412_v51 = vadd.f32 %v1337_v54, %v167_v52  ;;  %v1414_v25 = vadd.f32 %v1408_v0, %v169_v63 }
 0x6be   :  { %1756 = vpow2.f32 %v1647_v62  ;;  %v1648_v57 = vmul.f32 -1.442695, %v1412_v51  ;;  %v1649_v1 = vmul.f32 -1.442695, %v1414_v25 }
 0x6c0   :  { %1758 = vpow2.f32 %v1648_v57 }
 0x6c1   :  { %1760 = vpow2.f32 %v1649_v1 }
 0x6cb   :  { %v1757_v45 = vpop.eup %1756 }
 0x6cc   :  { %v1418_v42 = vadd.f32 1.0, %v1757_v45 }
 0x6cd   :  { %v1759_v6 = vpop.eup %1758 }
 0x6ce   :  { %1762 = vrcp.f32 %v1418_v42  ;;  %v1424_v4 = vadd.f32 1.0, %v1759_v6  ;;  %v1761_v3 = vpop.eup %1760 }
 0x6cf   :  { %1764 = vtanh.f32 %v1413_v2  ;;  %v1431_v26 = vadd.f32 1.0, %v1761_v3 }
 0x6d0   :  { %1766 = vrcp.f32 %v1424_v4 }
 0x6d1   :  { %1768 = vrcp.f32 %v1431_v26 }
 0x6db   :  { %v1763_v56 = vpop.eup %1762 }
 0x6dc   :  { %v1765_v55 = vpop.eup %1764 }
 0x6dd   :  { %v1767_v5 = vpop.eup %1766  ;;  %v1435_v35 = vmul.f32 %v1765_v55, %v1763_v56 }
 0x6de   :  { %v1434_v46 = vmul.f32 %v1767_v5, %v3126_v23  ;;  %v1769_v7 = vpop.eup %1768  ;;  %v171_v23 = vadd.f32 %v3526_v58, %v117_v11 }
 0x6e0   :  { %v1436_v30 = vadd.f32 %v1435_v35, %v1434_v46 }
 0x6e2   :  { %1770 = vtanh.f32 %v1436_v30 }
 0x6ef   :  { %v1771_v53 = vpop.eup %1770 }
 0x6f0   :  { %v1438_v8 = vmul.f32 %v1771_v53, %v1769_v7 }
 0x6f2   :  { %1440 = vst [vmem:[#allocation2 + $0x30] sm:$0xff] %v1438_v8  ;;  %1506 = vmatmul.mubr.f32.vlgmr.msra.gmra.mxu0 %v1438_v8  ;;  %1577 = vmatmul.mubr.f32.vlgmr.msra.gmra.mxu1 %v1438_v8 }
 0x7b2   :  { %v1507_v13 = vpop.f32.mrf.mxu0  ;;  %v1578_v18 = vpop.f32.mrf.mxu1 }
 0x7b3   :  { %v1583_v14 = vadd.f32 %v1507_v13, %v170_v12  ;;  %v1585_v32 = vadd.f32 %v1578_v18, %v172_v59 }
 0x7b4   :  { %v1509_v15 = vpop.f32.mrf.mxu0  ;;  %v1580_v21 = vpop.f32.mrf.mxu1 }
 0x7b5   :  { %v1650_v16 = vmul.f32 -1.442695, %v1583_v14  ;;  %v1584_v17 = vadd.f32 %v1509_v15, %v171_v23  ;;  %v1586_v27 = vadd.f32 %v1580_v21, %v173_v22 }
 0x7b7   :  { %1772 = vpow2.f32 %v1650_v16  ;;  %v1651_v19 = vmul.f32 -1.442695, %v1584_v17  ;;  %v1652_v29 = vmul.f32 -1.442695, %v1586_v27 }
 0x7b9   :  { %1774 = vpow2.f32 %v1651_v19 }
 0x7ba   :  { %1776 = vpow2.f32 %v1652_v29 }
 0x7c4   :  { %v1773_v31 = vpop.eup %1772 }
 0x7c5   :  { %v1590_v33 = vadd.f32 1.0, %v1773_v31 }
 0x7c6   :  { %v1775_v34 = vpop.eup %1774 }
 0x7c7   :  { %1778 = vrcp.f32 %v1590_v33  ;;  %v1596_v36 = vadd.f32 1.0, %v1775_v34  ;;  %v1777_v50 = vpop.eup %1776 }
 0x7c8   :  { %1780 = vtanh.f32 %v1585_v32  ;;  %v1603_v40 = vadd.f32 1.0, %v1777_v50 }
 0x7c9   :  { %1782 = vrcp.f32 %v1596_v36 }
 0x7ca   :  { %1784 = vrcp.f32 %v1603_v40 }
 0x7d4   :  { %v1779_v37 = vpop.eup %1778 }
 0x7d5   :  { %v1781_v38 = vpop.eup %1780 }
 0x7d6   :  { %v1783_v39 = vpop.eup %1782  ;;  %v1607_v41 = vmul.f32 %v1781_v38, %v1779_v37 }
 0x7d7   :  { %v1606_v43 = vmul.f32 %v1783_v39, %v1436_v30  ;;  %v1785_v49 = vpop.eup %1784 }
 0x7d9   :  { %v1608_v47 = vadd.f32 %v1607_v41, %v1606_v43 }
 0x7db   :  { %1786 = vtanh.f32 %v1608_v47 }
 0x7e8   :  { %v1787_v58 = vpop.eup %1786 }
 0x7e9   :  { %v1610_v52 = vmul.f32 %v1787_v58, %v1785_v49 }
 0x7eb   :  { %1612 = vst [vmem:[#allocation2 + $0x38] sm:$0xff] %v1610_v52 }
 0x7ec   :  { %1863 = shalt.err (!%p1860_p4)
}
 0x7ed   :  { %s1877_s18 = smov 128   ;;  %s1878_s19 = smov 8  }
 0x7ee   :  { %1624 = dma.vmem_to_hbm [thread:$0]  %s1619_s16, 1024, %s3217_s4, [#allocation3], %s1877_s18, %s1877_s18, %s1878_s19  }
 0x7ef   :  { %1872 = dma.done.wait [#allocation3], 1024  }
 0x7f0   :  { %1873 = vsyncadd [#allocation3], 4294966272 }
 0x7f1   :  { %1628 = vsyncpa [#allocation3], 1 }

</bundles_post_ra>
